<compile_context>
chip_gen: v7x
topology: tpu7x:2x2x1
jax: 0.10.0
libtpu: 0.0.40
codegen_flags: <defaults>
</compile_context>

<pallas_src>
import jax
import jax.numpy as jnp
from jax.experimental import pallas as pl
from jax.experimental.pallas import tpu as pltpu


# ----------------------------- path selection -------------------------------
_ONEHOT_MAX_ROWS = 2048                 # beyond this, one-hot VALU/MXU work scales badly
_ONEHOT_TABLE_BUDGET_BYTES = 32 * 2**20  # conservative vs v7x 64 MiB / TC VMEM


# --------------------------- one-hot (MXU) kernel ---------------------------
def _mf_onehot_kernel(uid_ref, iid_ref, uft_ref, ift_ref, o_ref):
    """Score rows*bm (user, item) pairs per grid step.

    uid_ref, iid_ref : (rows, bm) int32   0-based, pre-clamped ids
    uft_ref          : (F, n_users) f32   user table (transposed), VMEM-resident
    ift_ref          : (F, n_items) f32   item table (transposed), VMEM-resident
    o_ref            : (rows, bm) f32     full-tile, lane-dense output block
    """
    rows, bm = uid_ref.shape
    n_users = uft_ref.shape[1]
    n_items = ift_ref.shape[1]

    # Static unroll over the 8 sublane rows; each row does an exact one-hot
    # gather on the MXU with the batch on the lane axis.
    for r in range(rows):
        uids = uid_ref[pl.ds(r, 1), :]                       # (1, bm)
        iids = iid_ref[pl.ds(r, 1), :]                       # (1, bm)
        u_sel = (jax.lax.broadcasted_iota(jnp.int32, (n_users, bm), 0)
                 == uids).astype(uft_ref.dtype)              # (n_users, bm)
        i_sel = (jax.lax.broadcasted_iota(jnp.int32, (n_items, bm), 0)
                 == iids).astype(ift_ref.dtype)              # (n_items, bm)
        u = jnp.dot(uft_ref[...], u_sel,
                    preferred_element_type=jnp.float32)      # (F, bm)
        it = jnp.dot(ift_ref[...], i_sel,
                     preferred_element_type=jnp.float32)     # (F, bm)
        o_ref[pl.ds(r, 1), :] = jnp.sum(u * it, axis=0, keepdims=True) * 5.0


def _forward_onehot(u0, i0, user_factors, item_factors,
                    *, block_b=128, rows_per_step=8):
    B = u0.shape[0]
    n_users, F = user_factors.shape
    n_items, _ = item_factors.shape
    itemsize = jnp.dtype(user_factors.dtype).itemsize

    pairs_per_step = rows_per_step * block_b
    num_steps = pl.cdiv(B, pairs_per_step)
    b_pad = num_steps * pairs_per_step

    # Pad to full (8, 128) id / output tiles (padded lanes use row 0, results
    # are sliced off at the end).
    u2 = jnp.pad(u0, (0, b_pad - B)).reshape(num_steps * rows_per_step, block_b)
    i2 = jnp.pad(i0, (0, b_pad - B)).reshape(num_steps * rows_per_step, block_b)

    # Factor dim on sublanes, table rows on lanes -> gathered (F, bm) tiles
    # reduce straight into lane-dense output rows.
    # TODO(synk): on v6e/v7x, casting the tables (and one-hots) to bfloat16
    # would halve residency and feed the 256x256 MXU at full rate; kept f32
    # here for bit-exactness and because v5e's VPU has no bf16 datapath.
    uft = user_factors.T  # (F, n_users)
    ift = item_factors.T  # (F, n_items)

    # Explicit scoped-VMEM budget: single-buffered tables + one-hot
    # intermediates + double-buffered id/out tiles, with headroom.
    table_vmem = (n_users + n_items) * F * itemsize
    onehot_vmem = 4 * (n_users + n_items) * block_b * 4
    io_vmem = 2 * 3 * rows_per_step * block_b * 4
    vmem_limit = int(min(48 * 2**20,
                         max(32 * 2**20, table_vmem + onehot_vmem + io_vmem
                             + 8 * 2**20)))

    grid_spec = pltpu.PrefetchScalarGridSpec(
        num_scalar_prefetch=0,
        grid=(num_steps,),
        in_specs=[
            pl.BlockSpec((rows_per_step, block_b), lambda i: (i, 0)),  # user ids
            pl.BlockSpec((rows_per_step, block_b), lambda i: (i, 0)),  # item ids
            # Whole tables as unblocked VMEM operands: one resident copy for
            # the entire call, no per-step re-DMA, no double-buffering.
            pl.BlockSpec(memory_space=pltpu.MemorySpace.VMEM),
            pl.BlockSpec(memory_space=pltpu.MemorySpace.VMEM),
        ],
        out_specs=pl.BlockSpec((rows_per_step, block_b), lambda i: (i, 0)),
    )

    out = pl.pallas_call(
        _mf_onehot_kernel,
        out_shape=jax.ShapeDtypeStruct((num_steps * rows_per_step, block_b),
                                       jnp.float32),
        grid_spec=grid_spec,
        compiler_params=pltpu.CompilerParams(
            dimension_semantics=("parallel",),   # split batch blocks across TCs (v7x)
            vmem_limit_bytes=vmem_limit),
    )(u2, i2, uft, ift)

    return out.reshape(b_pad)[:B]


# ----------------------- row-gather (large-table) path ----------------------
def _mf_rowgather_kernel(uid_sref, iid_sref, u_row_ref, i_row_ref, o_ref):
    """One (user, item) pair per grid step; rows arrive via data-dependent
    BlockSpec gathers driven by the scalar-prefetched ids.

    u_row_ref, i_row_ref : (1, F) f32 gathered embedding rows
    o_ref                : (1, 1) f32
    """
    score = jnp.sum(u_row_ref[...] * i_row_ref[...]) * 5.0
    o_ref[...] = score.reshape(1, 1)


def _forward_rowgather(u0, i0, user_factors, item_factors):
    # TODO(synk): for higher throughput at scale, replace the per-row grid
    # with a manual make_async_copy multi-row gather (double/triple buffered)
    # so several pairs are scored per grid step.
    B = u0.shape[0]
    n_users, F = user_factors.shape
    n_items, _ = item_factors.shape

    grid_spec = pltpu.PrefetchScalarGridSpec(
        num_scalar_prefetch=2,   # u0, i0 land in SMEM, feed the index_maps
        grid=(B,),
        in_specs=[
            pl.BlockSpec((1, F), lambda b, uid, iid: (uid[b], 0)),
            pl.BlockSpec((1, F), lambda b, uid, iid: (iid[b], 0)),
        ],
        out_specs=pl.BlockSpec((1, 1), lambda b, uid, iid: (b, 0)),
    )

    out = pl.pallas_call(
        _mf_rowgather_kernel,
        out_shape=jax.ShapeDtypeStruct((B, 1), jnp.float32),
        grid_spec=grid_spec,
        compiler_params=pltpu.CompilerParams(
            dimension_semantics=("arbitrary",),
            vmem_limit_bytes=32 * 2**20),
    )(u0, i0, user_factors, item_factors)

    return out.reshape(B)


# --------------------------------- wrapper ----------------------------------
def matrix_factorization_forward(user, item, user_factors, item_factors,
                                 *, force_path=None):
    """Pallas equivalent of MatrixFactorization.forward.

    user, item: (B,) integer ids, 1-based (the module subtracts 1 itself).
    Returns (B,) f32 == (user_factors[user-1] * item_factors[item-1]).sum(1)*5.
    """
    B = user.shape[0]
    n_users, F = user_factors.shape
    n_items, _ = item_factors.shape
    itemsize = jnp.dtype(user_factors.dtype).itemsize

    # 0-based ids, clamped once (so no OOB gather is possible in-kernel).
    u0 = jnp.clip(user.astype(jnp.int32) - 1, 0, n_users - 1)
    i0 = jnp.clip(item.astype(jnp.int32) - 1, 0, n_items - 1)

    # Residency / worthwhileness check for the resident one-hot path:
    #  - tables must fit a conservative per-TC VMEM budget (v7x: 64 MiB/TC),
    #  - one-hot compare/matmul cost scales with table rows, so cap them,
    #  - if B << table rows, reading whole tables from HBM is wasteful.
    table_bytes = (n_users + n_items) * F * itemsize
    small_tables = (max(n_users, n_items) <= _ONEHOT_MAX_ROWS
                    and table_bytes <= _ONEHOT_TABLE_BUDGET_BYTES)
    batch_worth_full_read = (n_users + n_items) <= max(1024, 4 * B)
    use_onehot = small_tables and batch_worth_full_read
    if force_path == "onehot":
        use_onehot = True
    elif force_path == "rowgather":
        use_onehot = False

    if use_onehot:
        return _forward_onehot(u0, i0, user_factors, item_factors)
    return _forward_rowgather(u0, i0, user_factors, item_factors)


# ----------------------------------- test -----------------------------------
if __name__ == "__main__":
    n_users, n_items, n_factors = 64, 48, 20
    B = 8

    key = jax.random.PRNGKey(0)
    k_u, k_i, k_uid, k_iid = jax.random.split(key, 4)

    # nn.Embedding default init: N(0, 1), float32
    user_factors = jax.random.normal(k_u, (n_users, n_factors), dtype=jnp.float32)
    item_factors = jax.random.normal(k_i, (n_items, n_factors), dtype=jnp.float32)

    # 1-based ids, like the PyTorch module expects (it subtracts 1 itself)
    user = jax.random.randint(k_uid, (B,), 1, n_users + 1, dtype=jnp.int32)
    item = jax.random.randint(k_iid, (B,), 1, n_items + 1, dtype=jnp.int32)

    ref = (user_factors[user - 1] * item_factors[item - 1]).sum(axis=1) * 5.0

    # Default path (one-hot / resident tables at these sizes).
    out = matrix_factorization_forward(user, item, user_factors, item_factors)
    out = jax.block_until_ready(out)
    assert out.shape == (B,)
    assert jnp.allclose(out, ref, atol=1e-3, rtol=1e-3), (out, ref)

    # Large-table fallback path, forced, checked at the same small size.
    out_rg = matrix_factorization_forward(user, item, user_factors, item_factors,
                                          force_path="rowgather")
    out_rg = jax.block_until_ready(out_rg)
    assert out_rg.shape == (B,)
    assert jnp.allclose(out_rg, ref, atol=1e-3, rtol=1e-3), (out_rg, ref)

    print("KERNEL_OK")
</pallas_src>

<mosaic_0001>
module attributes {stable_mosaic.version = 11 : i64} {
  func.func @_mf_onehot_kernel(%arg0: i32, %arg1: memref<8x128xi32, #tpu.memory_space<vmem>>, %arg2: memref<8x128xi32, #tpu.memory_space<vmem>>, %arg3: memref<20x64xf32, #tpu.memory_space<vmem>>, %arg4: memref<20x48xf32, #tpu.memory_space<vmem>>, %arg5: memref<8x128xf32, #tpu.memory_space<vmem>>) attributes {dimension_semantics = [#tpu.dimension_semantics<parallel>], iteration_bounds = array<i64: 1>, scalar_prefetch = 0 : i64, scratch_operands = 0 : i64, tpu.core_type = #tpu.core_type<tc>, window_params = [{transform_indices = @transform_0, window_bounds = array<i64: 8, 128>}, {transform_indices = @transform_1, window_bounds = array<i64: 8, 128>}, {pipeline_mode = #tpu.pipeline_mode<synchronous>, transform_indices = @transform_2, window_bounds = array<i64: 20, 64>}, {pipeline_mode = #tpu.pipeline_mode<synchronous>, transform_indices = @transform_3, window_bounds = array<i64: 20, 48>}, {transform_indices = @transform_4, window_bounds = array<i64: 8, 128>}]} {
    %c0 = arith.constant 0 : index
    %c0_0 = arith.constant 0 : index
    %0 = vector.load %arg1[%c0, %c0_0] : memref<8x128xi32, #tpu.memory_space<vmem>>, vector<1x128xi32>
    %c0_1 = arith.constant 0 : index
    %c0_2 = arith.constant 0 : index
    %1 = vector.load %arg2[%c0_1, %c0_2] : memref<8x128xi32, #tpu.memory_space<vmem>>, vector<1x128xi32>
    %2 = tpu.iota {dimensions = array<i32: 0>} : vector<64x128xi32>
    %3 = vector.broadcast %0 : vector<1x128xi32> to vector<64x128xi32>
    %4 = arith.cmpi eq, %2, %3 : vector<64x128xi32>
    %5 = arith.extui %4 : vector<64x128xi1> to vector<64x128xi32>
    %6 = arith.sitofp %5 : vector<64x128xi32> to vector<64x128xf32>
    %7 = tpu.iota {dimensions = array<i32: 0>} : vector<48x128xi32>
    %8 = vector.broadcast %1 : vector<1x128xi32> to vector<48x128xi32>
    %9 = arith.cmpi eq, %7, %8 : vector<48x128xi32>
    %10 = arith.extui %9 : vector<48x128xi1> to vector<48x128xi32>
    %11 = arith.sitofp %10 : vector<48x128xi32> to vector<48x128xf32>
    %c0_3 = arith.constant 0 : index
    %c0_4 = arith.constant 0 : index
    %12 = vector.load %arg3[%c0_3, %c0_4] : memref<20x64xf32, #tpu.memory_space<vmem>>, vector<20x64xf32>
    %cst = arith.constant dense<0.000000e+00> : vector<20x128xf32>
    %13 = tpu.matmul %12, %6, %cst {dimension_numbers = #tpu.dot_dimension_numbers<[1], [0], [0], [1], [0, 0, 1, 1], [], []>} : vector<20x64xf32>, vector<64x128xf32>, vector<20x128xf32> -> vector<20x128xf32>
    %c0_5 = arith.constant 0 : index
    %c0_6 = arith.constant 0 : index
    %14 = vector.load %arg4[%c0_5, %c0_6] : memref<20x48xf32, #tpu.memory_space<vmem>>, vector<20x48xf32>
    %cst_7 = arith.constant dense<0.000000e+00> : vector<20x128xf32>
    %15 = tpu.matmul %14, %11, %cst_7 {dimension_numbers = #tpu.dot_dimension_numbers<[1], [0], [0], [1], [0, 0, 1, 1], [], []>} : vector<20x48xf32>, vector<48x128xf32>, vector<20x128xf32> -> vector<20x128xf32>
    %16 = arith.mulf %13, %15 : vector<20x128xf32>
    %cst_8 = arith.constant dense<0.000000e+00> : vector<128xf32>
    %17 = vector.multi_reduction <add>, %16, %cst_8 [0] : vector<20x128xf32> to vector<128xf32>
    %18 = vector.shape_cast %17 : vector<128xf32> to vector<1x128xf32>
    %cst_9 = arith.constant 5.000000e+00 : f32
    %19 = vector.broadcast %cst_9 : f32 to vector<1x128xf32>
    %20 = arith.mulf %18, %19 : vector<1x128xf32>
    %c0_10 = arith.constant 0 : index
    %c0_11 = arith.constant 0 : index
    %21 = vector.load %arg5[%c0_10, %c0_11] : memref<8x128xf32, #tpu.memory_space<vmem>>, vector<1x128xf32>
    tpu.vector_store %arg5[%c0_10, %c0_11], %20 {strides = array<i32>} : memref<8x128xf32, #tpu.memory_space<vmem>>, vector<1x128xf32>,
    %c1 = arith.constant 1 : index
    %c0_12 = arith.constant 0 : index
    %22 = vector.load %arg1[%c1, %c0_12] : memref<8x128xi32, #tpu.memory_space<vmem>>, vector<1x128xi32>
    %c1_13 = arith.constant 1 : index
    %c0_14 = arith.constant 0 : index
    %23 = vector.load %arg2[%c1_13, %c0_14] : memref<8x128xi32, #tpu.memory_space<vmem>>, vector<1x128xi32>
    %24 = tpu.iota {dimensions = array<i32: 0>} : vector<64x128xi32>
    %25 = vector.broadcast %22 : vector<1x128xi32> to vector<64x128xi32>
    %26 = arith.cmpi eq, %24, %25 : vector<64x128xi32>
    %27 = arith.extui %26 : vector<64x128xi1> to vector<64x128xi32>
    %28 = arith.sitofp %27 : vector<64x128xi32> to vector<64x128xf32>
    %29 = tpu.iota {dimensions = array<i32: 0>} : vector<48x128xi32>
    %30 = vector.broadcast %23 : vector<1x128xi32> to vector<48x128xi32>
    %31 = arith.cmpi eq, %29, %30 : vector<48x128xi32>
    %32 = arith.extui %31 : vector<48x128xi1> to vector<48x128xi32>
    %33 = arith.sitofp %32 : vector<48x128xi32> to vector<48x128xf32>
    %c0_15 = arith.constant 0 : index
    %c0_16 = arith.constant 0 : index
    %34 = vector.load %arg3[%c0_15, %c0_16] : memref<20x64xf32, #tpu.memory_space<vmem>>, vector<20x64xf32>
    %cst_17 = arith.constant dense<0.000000e+00> : vector<20x128xf32>
    %35 = tpu.matmul %34, %28, %cst_17 {dimension_numbers = #tpu.dot_dimension_numbers<[1], [0], [0], [1], [0, 0, 1, 1], [], []>} : vector<20x64xf32>, vector<64x128xf32>, vector<20x128xf32> -> vector<20x128xf32>
    %c0_18 = arith.constant 0 : index
    %c0_19 = arith.constant 0 : index
    %36 = vector.load %arg4[%c0_18, %c0_19] : memref<20x48xf32, #tpu.memory_space<vmem>>, vector<20x48xf32>
    %cst_20 = arith.constant dense<0.000000e+00> : vector<20x128xf32>
    %37 = tpu.matmul %36, %33, %cst_20 {dimension_numbers = #tpu.dot_dimension_numbers<[1], [0], [0], [1], [0, 0, 1, 1], [], []>} : vector<20x48xf32>, vector<48x128xf32>, vector<20x128xf32> -> vector<20x128xf32>
    %38 = arith.mulf %35, %37 : vector<20x128xf32>
    %cst_21 = arith.constant dense<0.000000e+00> : vector<128xf32>
    %39 = vector.multi_reduction <add>, %38, %cst_21 [0] : vector<20x128xf32> to vector<128xf32>
    %40 = vector.shape_cast %39 : vector<128xf32> to vector<1x128xf32>
    %cst_22 = arith.constant 5.000000e+00 : f32
    %41 = vector.broadcast %cst_22 : f32 to vector<1x128xf32>
    %42 = arith.mulf %40, %41 : vector<1x128xf32>
    %c1_23 = arith.constant 1 : index
    %c0_24 = arith.constant 0 : index
    %43 = vector.load %arg5[%c1_23, %c0_24] : memref<8x128xf32, #tpu.memory_space<vmem>>, vector<1x128xf32>
    tpu.vector_store %arg5[%c1_23, %c0_24], %42 {strides = array<i32>} : memref<8x128xf32, #tpu.memory_space<vmem>>, vector<1x128xf32>,
    %c2 = arith.constant 2 : index
    %c0_25 = arith.constant 0 : index
    %44 = vector.load %arg1[%c2, %c0_25] : memref<8x128xi32, #tpu.memory_space<vmem>>, vector<1x128xi32>
    %c2_26 = arith.constant 2 : index
    %c0_27 = arith.constant 0 : index
    %45 = vector.load %arg2[%c2_26, %c0_27] : memref<8x128xi32, #tpu.memory_space<vmem>>, vector<1x128xi32>
    %46 = tpu.iota {dimensions = array<i32: 0>} : vector<64x128xi32>
    %47 = vector.broadcast %44 : vector<1x128xi32> to vector<64x128xi32>
    %48 = arith.cmpi eq, %46, %47 : vector<64x128xi32>
    %49 = arith.extui %48 : vector<64x128xi1> to vector<64x128xi32>
    %50 = arith.sitofp %49 : vector<64x128xi32> to vector<64x128xf32>
    %51 = tpu.iota {dimensions = array<i32: 0>} : vector<48x128xi32>
    %52 = vector.broadcast %45 : vector<1x128xi32> to vector<48x128xi32>
    %53 = arith.cmpi eq, %51, %52 : vector<48x128xi32>
    %54 = arith.extui %53 : vector<48x128xi1> to vector<48x128xi32>
    %55 = arith.sitofp %54 : vector<48x128xi32> to vector<48x128xf32>
    %c0_28 = arith.constant 0 : index
    %c0_29 = arith.constant 0 : index
    %56 = vector.load %arg3[%c0_28, %c0_29] : memref<20x64xf32, #tpu.memory_space<vmem>>, vector<20x64xf32>
    %cst_30 = arith.constant dense<0.000000e+00> : vector<20x128xf32>
    %57 = tpu.matmul %56, %50, %cst_30 {dimension_numbers = #tpu.dot_dimension_numbers<[1], [0], [0], [1], [0, 0, 1, 1], [], []>} : vector<20x64xf32>, vector<64x128xf32>, vector<20x128xf32> -> vector<20x128xf32>
    %c0_31 = arith.constant 0 : index
    %c0_32 = arith.constant 0 : index
    %58 = vector.load %arg4[%c0_31, %c0_32] : memref<20x48xf32, #tpu.memory_space<vmem>>, vector<20x48xf32>
    %cst_33 = arith.constant dense<0.000000e+00> : vector<20x128xf32>
    %59 = tpu.matmul %58, %55, %cst_33 {dimension_numbers = #tpu.dot_dimension_numbers<[1], [0], [0], [1], [0, 0, 1, 1], [], []>} : vector<20x48xf32>, vector<48x128xf32>, vector<20x128xf32> -> vector<20x128xf32>
    %60 = arith.mulf %57, %59 : vector<20x128xf32>
    %cst_34 = arith.constant dense<0.000000e+00> : vector<128xf32>
    %61 = vector.multi_reduction <add>, %60, %cst_34 [0] : vector<20x128xf32> to vector<128xf32>
    %62 = vector.shape_cast %61 : vector<128xf32> to vector<1x128xf32>
    %cst_35 = arith.constant 5.000000e+00 : f32
    %63 = vector.broadcast %cst_35 : f32 to vector<1x128xf32>
    %64 = arith.mulf %62, %63 : vector<1x128xf32>
    %c2_36 = arith.constant 2 : index
    %c0_37 = arith.constant 0 : index
    %65 = vector.load %arg5[%c2_36, %c0_37] : memref<8x128xf32, #tpu.memory_space<vmem>>, vector<1x128xf32>
    tpu.vector_store %arg5[%c2_36, %c0_37], %64 {strides = array<i32>} : memref<8x128xf32, #tpu.memory_space<vmem>>, vector<1x128xf32>,
    %c3 = arith.constant 3 : index
    %c0_38 = arith.constant 0 : index
    %66 = vector.load %arg1[%c3, %c0_38] : memref<8x128xi32, #tpu.memory_space<vmem>>, vector<1x128xi32>
    %c3_39 = arith.constant 3 : index
    %c0_40 = arith.constant 0 : index
    %67 = vector.load %arg2[%c3_39, %c0_40] : memref<8x128xi32, #tpu.memory_space<vmem>>, vector<1x128xi32>
    %68 = tpu.iota {dimensions = array<i32: 0>} : vector<64x128xi32>
    %69 = vector.broadcast %66 : vector<1x128xi32> to vector<64x128xi32>
    %70 = arith.cmpi eq, %68, %69 : vector<64x128xi32>
    %71 = arith.extui %70 : vector<64x128xi1> to vector<64x128xi32>
    %72 = arith.sitofp %71 : vector<64x128xi32> to vector<64x128xf32>
    %73 = tpu.iota {dimensions = array<i32: 0>} : vector<48x128xi32>
    %74 = vector.broadcast %67 : vector<1x128xi32> to vector<48x128xi32>
    %75 = arith.cmpi eq, %73, %74 : vector<48x128xi32>
    %76 = arith.extui %75 : vector<48x128xi1> to vector<48x128xi32>
    %77 = arith.sitofp %76 : vector<48x128xi32> to vector<48x128xf32>
    %c0_41 = arith.constant 0 : index
    %c0_42 = arith.constant 0 : index
    %78 = vector.load %arg3[%c0_41, %c0_42] : memref<20x64xf32, #tpu.memory_space<vmem>>, vector<20x64xf32>
    %cst_43 = arith.constant dense<0.000000e+00> : vector<20x128xf32>
    %79 = tpu.matmul %78, %72, %cst_43 {dimension_numbers = #tpu.dot_dimension_numbers<[1], [0], [0], [1], [0, 0, 1, 1], [], []>} : vector<20x64xf32>, vector<64x128xf32>, vector<20x128xf32> -> vector<20x128xf32>
    %c0_44 = arith.constant 0 : index
    %c0_45 = arith.constant 0 : index
    %80 = vector.load %arg4[%c0_44, %c0_45] : memref<20x48xf32, #tpu.memory_space<vmem>>, vector<20x48xf32>
    %cst_46 = arith.constant dense<0.000000e+00> : vector<20x128xf32>
    %81 = tpu.matmul %80, %77, %cst_46 {dimension_numbers = #tpu.dot_dimension_numbers<[1], [0], [0], [1], [0, 0, 1, 1], [], []>} : vector<20x48xf32>, vector<48x128xf32>, vector<20x128xf32> -> vector<20x128xf32>
    %82 = arith.mulf %79, %81 : vector<20x128xf32>
    %cst_47 = arith.constant dense<0.000000e+00> : vector<128xf32>
    %83 = vector.multi_reduction <add>, %82, %cst_47 [0] : vector<20x128xf32> to vector<128xf32>
    %84 = vector.shape_cast %83 : vector<128xf32> to vector<1x128xf32>
    %cst_48 = arith.constant 5.000000e+00 : f32
    %85 = vector.broadcast %cst_48 : f32 to vector<1x128xf32>
    %86 = arith.mulf %84, %85 : vector<1x128xf32>
    %c3_49 = arith.constant 3 : index
    %c0_50 = arith.constant 0 : index
    %87 = vector.load %arg5[%c3_49, %c0_50] : memref<8x128xf32, #tpu.memory_space<vmem>>, vector<1x128xf32>
    tpu.vector_store %arg5[%c3_49, %c0_50], %86 {strides = array<i32>} : memref<8x128xf32, #tpu.memory_space<vmem>>, vector<1x128xf32>,
    %c4 = arith.constant 4 : index
    %c0_51 = arith.constant 0 : index
    %88 = vector.load %arg1[%c4, %c0_51] : memref<8x128xi32, #tpu.memory_space<vmem>>, vector<1x128xi32>
    %c4_52 = arith.constant 4 : index
    %c0_53 = arith.constant 0 : index
    %89 = vector.load %arg2[%c4_52, %c0_53] : memref<8x128xi32, #tpu.memory_space<vmem>>, vector<1x128xi32>
    %90 = tpu.iota {dimensions = array<i32: 0>} : vector<64x128xi32>
    %91 = vector.broadcast %88 : vector<1x128xi32> to vector<64x128xi32>
    %92 = arith.cmpi eq, %90, %91 : vector<64x128xi32>
    %93 = arith.extui %92 : vector<64x128xi1> to vector<64x128xi32>
    %94 = arith.sitofp %93 : vector<64x128xi32> to vector<64x128xf32>
    %95 = tpu.iota {dimensions = array<i32: 0>} : vector<48x128xi32>
    %96 = vector.broadcast %89 : vector<1x128xi32> to vector<48x128xi32>
    %97 = arith.cmpi eq, %95, %96 : vector<48x128xi32>
    %98 = arith.extui %97 : vector<48x128xi1> to vector<48x128xi32>
    %99 = arith.sitofp %98 : vector<48x128xi32> to vector<48x128xf32>
    %c0_54 = arith.constant 0 : index
    %c0_55 = arith.constant 0 : index
    %100 = vector.load %arg3[%c0_54, %c0_55] : memref<20x64xf32, #tpu.memory_space<vmem>>, vector<20x64xf32>
    %cst_56 = arith.constant dense<0.000000e+00> : vector<20x128xf32>
    %101 = tpu.matmul %100, %94, %cst_56 {dimension_numbers = #tpu.dot_dimension_numbers<[1], [0], [0], [1], [0, 0, 1, 1], [], []>} : vector<20x64xf32>, vector<64x128xf32>, vector<20x128xf32> -> vector<20x128xf32>
    %c0_57 = arith.constant 0 : index
    %c0_58 = arith.constant 0 : index
    %102 = vector.load %arg4[%c0_57, %c0_58] : memref<20x48xf32, #tpu.memory_space<vmem>>, vector<20x48xf32>
    %cst_59 = arith.constant dense<0.000000e+00> : vector<20x128xf32>
    %103 = tpu.matmul %102, %99, %cst_59 {dimension_numbers = #tpu.dot_dimension_numbers<[1], [0], [0], [1], [0, 0, 1, 1], [], []>} : vector<20x48xf32>, vector<48x128xf32>, vector<20x128xf32> -> vector<20x128xf32>
    %104 = arith.mulf %101, %103 : vector<20x128xf32>
    %cst_60 = arith.constant dense<0.000000e+00> : vector<128xf32>
    %105 = vector.multi_reduction <add>, %104, %cst_60 [0] : vector<20x128xf32> to vector<128xf32>
    %106 = vector.shape_cast %105 : vector<128xf32> to vector<1x128xf32>
    %cst_61 = arith.constant 5.000000e+00 : f32
    %107 = vector.broadcast %cst_61 : f32 to vector<1x128xf32>
    %108 = arith.mulf %106, %107 : vector<1x128xf32>
    %c4_62 = arith.constant 4 : index
    %c0_63 = arith.constant 0 : index
    %109 = vector.load %arg5[%c4_62, %c0_63] : memref<8x128xf32, #tpu.memory_space<vmem>>, vector<1x128xf32>
    tpu.vector_store %arg5[%c4_62, %c0_63], %108 {strides = array<i32>} : memref<8x128xf32, #tpu.memory_space<vmem>>, vector<1x128xf32>,
    %c5 = arith.constant 5 : index
    %c0_64 = arith.constant 0 : index
    %110 = vector.load %arg1[%c5, %c0_64] : memref<8x128xi32, #tpu.memory_space<vmem>>, vector<1x128xi32>
    %c5_65 = arith.constant 5 : index
    %c0_66 = arith.constant 0 : index
    %111 = vector.load %arg2[%c5_65, %c0_66] : memref<8x128xi32, #tpu.memory_space<vmem>>, vector<1x128xi32>
    %112 = tpu.iota {dimensions = array<i32: 0>} : vector<64x128xi32>
    %113 = vector.broadcast %110 : vector<1x128xi32> to vector<64x128xi32>
    %114 = arith.cmpi eq, %112, %113 : vector<64x128xi32>
    %115 = arith.extui %114 : vector<64x128xi1> to vector<64x128xi32>
    %116 = arith.sitofp %115 : vector<64x128xi32> to vector<64x128xf32>
    %117 = tpu.iota {dimensions = array<i32: 0>} : vector<48x128xi32>
    %118 = vector.broadcast %111 : vector<1x128xi32> to vector<48x128xi32>
    %119 = arith.cmpi eq, %117, %118 : vector<48x128xi32>
    %120 = arith.extui %119 : vector<48x128xi1> to vector<48x128xi32>
    %121 = arith.sitofp %120 : vector<48x128xi32> to vector<48x128xf32>
    %c0_67 = arith.constant 0 : index
    %c0_68 = arith.constant 0 : index
    %122 = vector.load %arg3[%c0_67, %c0_68] : memref<20x64xf32, #tpu.memory_space<vmem>>, vector<20x64xf32>
    %cst_69 = arith.constant dense<0.000000e+00> : vector<20x128xf32>
    %123 = tpu.matmul %122, %116, %cst_69 {dimension_numbers = #tpu.dot_dimension_numbers<[1], [0], [0], [1], [0, 0, 1, 1], [], []>} : vector<20x64xf32>, vector<64x128xf32>, vector<20x128xf32> -> vector<20x128xf32>
    %c0_70 = arith.constant 0 : index
    %c0_71 = arith.constant 0 : index
    %124 = vector.load %arg4[%c0_70, %c0_71] : memref<20x48xf32, #tpu.memory_space<vmem>>, vector<20x48xf32>
    %cst_72 = arith.constant dense<0.000000e+00> : vector<20x128xf32>
    %125 = tpu.matmul %124, %121, %cst_72 {dimension_numbers = #tpu.dot_dimension_numbers<[1], [0], [0], [1], [0, 0, 1, 1], [], []>} : vector<20x48xf32>, vector<48x128xf32>, vector<20x128xf32> -> vector<20x128xf32>
    %126 = arith.mulf %123, %125 : vector<20x128xf32>
    %cst_73 = arith.constant dense<0.000000e+00> : vector<128xf32>
    %127 = vector.multi_reduction <add>, %126, %cst_73 [0] : vector<20x128xf32> to vector<128xf32>
    %128 = vector.shape_cast %127 : vector<128xf32> to vector<1x128xf32>
    %cst_74 = arith.constant 5.000000e+00 : f32
    %129 = vector.broadcast %cst_74 : f32 to vector<1x128xf32>
    %130 = arith.mulf %128, %129 : vector<1x128xf32>
    %c5_75 = arith.constant 5 : index
    %c0_76 = arith.constant 0 : index
    %131 = vector.load %arg5[%c5_75, %c0_76] : memref<8x128xf32, #tpu.memory_space<vmem>>, vector<1x128xf32>
    tpu.vector_store %arg5[%c5_75, %c0_76], %130 {strides = array<i32>} : memref<8x128xf32, #tpu.memory_space<vmem>>, vector<1x128xf32>,
    %c6 = arith.constant 6 : index
    %c0_77 = arith.constant 0 : index
    %132 = vector.load %arg1[%c6, %c0_77] : memref<8x128xi32, #tpu.memory_space<vmem>>, vector<1x128xi32>
    %c6_78 = arith.constant 6 : index
    %c0_79 = arith.constant 0 : index
    %133 = vector.load %arg2[%c6_78, %c0_79] : memref<8x128xi32, #tpu.memory_space<vmem>>, vector<1x128xi32>
    %134 = tpu.iota {dimensions = array<i32: 0>} : vector<64x128xi32>
    %135 = vector.broadcast %132 : vector<1x128xi32> to vector<64x128xi32>
    %136 = arith.cmpi eq, %134, %135 : vector<64x128xi32>
    %137 = arith.extui %136 : vector<64x128xi1> to vector<64x128xi32>
    %138 = arith.sitofp %137 : vector<64x128xi32> to vector<64x128xf32>
    %139 = tpu.iota {dimensions = array<i32: 0>} : vector<48x128xi32>
    %140 = vector.broadcast %133 : vector<1x128xi32> to vector<48x128xi32>
    %141 = arith.cmpi eq, %139, %140 : vector<48x128xi32>
    %142 = arith.extui %141 : vector<48x128xi1> to vector<48x128xi32>
    %143 = arith.sitofp %142 : vector<48x128xi32> to vector<48x128xf32>
    %c0_80 = arith.constant 0 : index
    %c0_81 = arith.constant 0 : index
    %144 = vector.load %arg3[%c0_80, %c0_81] : memref<20x64xf32, #tpu.memory_space<vmem>>, vector<20x64xf32>
    %cst_82 = arith.constant dense<0.000000e+00> : vector<20x128xf32>
    %145 = tpu.matmul %144, %138, %cst_82 {dimension_numbers = #tpu.dot_dimension_numbers<[1], [0], [0], [1], [0, 0, 1, 1], [], []>} : vector<20x64xf32>, vector<64x128xf32>, vector<20x128xf32> -> vector<20x128xf32>
    %c0_83 = arith.constant 0 : index
    %c0_84 = arith.constant 0 : index
    %146 = vector.load %arg4[%c0_83, %c0_84] : memref<20x48xf32, #tpu.memory_space<vmem>>, vector<20x48xf32>
    %cst_85 = arith.constant dense<0.000000e+00> : vector<20x128xf32>
    %147 = tpu.matmul %146, %143, %cst_85 {dimension_numbers = #tpu.dot_dimension_numbers<[1], [0], [0], [1], [0, 0, 1, 1], [], []>} : vector<20x48xf32>, vector<48x128xf32>, vector<20x128xf32> -> vector<20x128xf32>
    %148 = arith.mulf %145, %147 : vector<20x128xf32>
    %cst_86 = arith.constant dense<0.000000e+00> : vector<128xf32>
    %149 = vector.multi_reduction <add>, %148, %cst_86 [0] : vector<20x128xf32> to vector<128xf32>
    %150 = vector.shape_cast %149 : vector<128xf32> to vector<1x128xf32>
    %cst_87 = arith.constant 5.000000e+00 : f32
    %151 = vector.broadcast %cst_87 : f32 to vector<1x128xf32>
    %152 = arith.mulf %150, %151 : vector<1x128xf32>
    %c6_88 = arith.constant 6 : index
    %c0_89 = arith.constant 0 : index
    %153 = vector.load %arg5[%c6_88, %c0_89] : memref<8x128xf32, #tpu.memory_space<vmem>>, vector<1x128xf32>
    tpu.vector_store %arg5[%c6_88, %c0_89], %152 {strides = array<i32>} : memref<8x128xf32, #tpu.memory_space<vmem>>, vector<1x128xf32>,
    %c7 = arith.constant 7 : index
    %c0_90 = arith.constant 0 : index
    %154 = vector.load %arg1[%c7, %c0_90] : memref<8x128xi32, #tpu.memory_space<vmem>>, vector<1x128xi32>
    %c7_91 = arith.constant 7 : index
    %c0_92 = arith.constant 0 : index
    %155 = vector.load %arg2[%c7_91, %c0_92] : memref<8x128xi32, #tpu.memory_space<vmem>>, vector<1x128xi32>
    %156 = tpu.iota {dimensions = array<i32: 0>} : vector<64x128xi32>
    %157 = vector.broadcast %154 : vector<1x128xi32> to vector<64x128xi32>
    %158 = arith.cmpi eq, %156, %157 : vector<64x128xi32>
    %159 = arith.extui %158 : vector<64x128xi1> to vector<64x128xi32>
    %160 = arith.sitofp %159 : vector<64x128xi32> to vector<64x128xf32>
    %161 = tpu.iota {dimensions = array<i32: 0>} : vector<48x128xi32>
    %162 = vector.broadcast %155 : vector<1x128xi32> to vector<48x128xi32>
    %163 = arith.cmpi eq, %161, %162 : vector<48x128xi32>
    %164 = arith.extui %163 : vector<48x128xi1> to vector<48x128xi32>
    %165 = arith.sitofp %164 : vector<48x128xi32> to vector<48x128xf32>
    %c0_93 = arith.constant 0 : index
    %c0_94 = arith.constant 0 : index
    %166 = vector.load %arg3[%c0_93, %c0_94] : memref<20x64xf32, #tpu.memory_space<vmem>>, vector<20x64xf32>
    %cst_95 = arith.constant dense<0.000000e+00> : vector<20x128xf32>
    %167 = tpu.matmul %166, %160, %cst_95 {dimension_numbers = #tpu.dot_dimension_numbers<[1], [0], [0], [1], [0, 0, 1, 1], [], []>} : vector<20x64xf32>, vector<64x128xf32>, vector<20x128xf32> -> vector<20x128xf32>
    %c0_96 = arith.constant 0 : index
    %c0_97 = arith.constant 0 : index
    %168 = vector.load %arg4[%c0_96, %c0_97] : memref<20x48xf32, #tpu.memory_space<vmem>>, vector<20x48xf32>
    %cst_98 = arith.constant dense<0.000000e+00> : vector<20x128xf32>
    %169 = tpu.matmul %168, %165, %cst_98 {dimension_numbers = #tpu.dot_dimension_numbers<[1], [0], [0], [1], [0, 0, 1, 1], [], []>} : vector<20x48xf32>, vector<48x128xf32>, vector<20x128xf32> -> vector<20x128xf32>
    %170 = arith.mulf %167, %169 : vector<20x128xf32>
    %cst_99 = arith.constant dense<0.000000e+00> : vector<128xf32>
    %171 = vector.multi_reduction <add>, %170, %cst_99 [0] : vector<20x128xf32> to vector<128xf32>
    %172 = vector.shape_cast %171 : vector<128xf32> to vector<1x128xf32>
    %cst_100 = arith.constant 5.000000e+00 : f32
    %173 = vector.broadcast %cst_100 : f32 to vector<1x128xf32>
    %174 = arith.mulf %172, %173 : vector<1x128xf32>
    %c7_101 = arith.constant 7 : index
    %c0_102 = arith.constant 0 : index
    %175 = vector.load %arg5[%c7_101, %c0_102] : memref<8x128xf32, #tpu.memory_space<vmem>>, vector<1x128xf32>
    tpu.vector_store %arg5[%c7_101, %c0_102], %174 {strides = array<i32>} : memref<8x128xf32, #tpu.memory_space<vmem>>, vector<1x128xf32>,
    return
  }
  func.func @transform_0(%arg0: i32) -> (i32, i32) {
    %c0_i32 = arith.constant 0 : i32
    %c0_i32_0 = arith.constant 0 : i32
    return %arg0, %c0_i32 : i32, i32
  }
  func.func @transform_1(%arg0: i32) -> (i32, i32) {
    %c0_i32 = arith.constant 0 : i32
    %c0_i32_0 = arith.constant 0 : i32
    return %arg0, %c0_i32 : i32, i32
  }
  func.func @transform_2(%arg0: i32) -> (i32, i32) {
    %c0_i32 = arith.constant 0 : i32
    %c0_i32_0 = arith.constant 0 : i32
    %c0_i32_1 = arith.constant 0 : i32
    return %c0_i32, %c0_i32_0 : i32, i32
  }
  func.func @transform_3(%arg0: i32) -> (i32, i32) {
    %c0_i32 = arith.constant 0 : i32
    %c0_i32_0 = arith.constant 0 : i32
    %c0_i32_1 = arith.constant 0 : i32
    return %c0_i32, %c0_i32_0 : i32, i32
  }
  func.func @transform_4(%arg0: i32) -> (i32, i32) {
    %c0_i32 = arith.constant 0 : i32
    %c0_i32_0 = arith.constant 0 : i32
    return %arg0, %c0_i32 : i32, i32
  }
}

</mosaic_0001>

<bundles_post_ra>
// kernel: tpu_custom_call.1
= control target key start
LH: loop header
LB: loop body
LE: loop exit
PB: predicated region body
PF: predicated region fallthrough
CT: control target
= control target key end

     0   :  { %9 = vsyncpa [#allocation3], 0  ;;  %s4198_s0 = inlined_call_operand.hbm [shape: s32[8,128], index: 0, kind: input, shape index: {}]   ;;  %s4199_s1 = inlined_call_operand.hbm [shape: s32[8,128], index: 1, kind: input, shape index: {}]   ;;  %s4200_s2 = inlined_call_operand.hbm [shape: f32[20,64], index: 2, kind: input, shape index: {}]   ;;  %s4201_s3 = inlined_call_operand.hbm [shape: f32[20,48], index: 3, kind: input, shape index: {}]   ;;  %s4202_s4 = inlined_call_operand.hbm [shape: f32[8,128], index: 4, kind: output, shape index: {}]  }
   0x1   :  { %10 = vsyncpa [#allocation6], 0 }
   0x2   :  { %11 = vsyncpa [#allocation9], 0 }
   0x3   :  { %12 = vsyncpa [#allocation4], 0  ;;  %s3211_s15 = smov [#allocation5]   ;;  %s3212_s17 = smov [#allocation2]  }
   0x4   :  { %s29_s16 = sshll.u32 %s3211_s15, 4  ;;  %s19_s18 = sshll.u32 %s3212_s17, 4  ;;  %s30_s16 = int_to_ptr.vmem [resolvable:$true] %s29_s16  ;;  %s20_s18 = int_to_ptr.vmem [resolvable:$true] %s19_s18 }
   0x5   :  { %s3093_s21 = scalar_lea.hbm %s4199_s1, 128 }
   0x6   :  { %p3094_p0 = scmp.ne.s32.totalorder %s4199_s1, %s3093_s21  ;;  %p3097_p1 = scmp.lt.u32.totalorder %s3093_s21, %s4199_s1 }
   0x8   :  { %p3099_p2 = pnand %p3097_p1, %p3094_p0 }
   0xa   :  { %3102 = shalt.err (!%p3099_p2)
}
   0xb   :  { %s3103_s26 = scalar_lea.vmem %s30_s16, 128  ;;  %p3108_p4 = scmp.lt.s32.totalorder %s30_s16, %s30_s16 }
   0xc   :  { %p3104_p3 = scmp.ne.s32.totalorder %s30_s16, %s3103_s26  ;;  %p3109_p5 = scmp.lt.s32.totalorder %s3103_s26, %s3103_s26 }
   0xe   :  { %p3110_p6 = por %p3109_p5, %p3108_p4 }
  0x10   :  { %p3111_p7 = pnand %p3110_p6, %p3104_p3 }
  0x12   :  { %3114 = shalt.err (!%p3111_p7)
}
  0x13   :  { %32 = dma.hbm_to_vmem [thread:$0]  %s4199_s1, 128, %s30_s16, [#allocation6]  }
  0x14   :  { %s3115_s5 = scalar_lea.hbm %s4198_s0, 128 }
  0x15   :  { %p3116_p8 = scmp.ne.s32.totalorder %s4198_s0, %s3115_s5  ;;  %p3119_p9 = scmp.lt.u32.totalorder %s3115_s5, %s4198_s0 }
  0x17   :  { %p3121_p10 = pnand %p3119_p9, %p3116_p8 }
  0x19   :  { %3124 = shalt.err (!%p3121_p10)
}
  0x1a   :  { %s3125_s10 = scalar_lea.vmem %s20_s18, 128  ;;  %p3130_p12 = scmp.lt.s32.totalorder %s20_s18, %s20_s18 }
  0x1b   :  { %p3126_p11 = scmp.ne.s32.totalorder %s20_s18, %s3125_s10  ;;  %p3131_p13 = scmp.lt.s32.totalorder %s3125_s10, %s3125_s10 }
  0x1d   :  { %p3132_p0 = por %p3131_p13, %p3130_p12 }
  0x1f   :  { %p3133_p1 = pnand %p3132_p0, %p3126_p11 }
  0x21   :  { %3136 = shalt.err (!%p3133_p1)
}
  0x22   :  { %22 = dma.hbm_to_vmem [thread:$0]  %s4198_s0, 128, %s20_s18, [#allocation3]  }
  0x23   :  { %s3213_s12 = smov [#allocation7]   ;;  %s3137_s16 = scalar_lea.hbm %s4200_s2, 384 }
  0x24   :  { %s38_s13 = sshll.u32 %s3213_s12, 4  ;;  %p3138_p2 = scmp.ne.s32.totalorder %s4200_s2, %s3137_s16  ;;  %s39_s13 = int_to_ptr.vmem [resolvable:$true] %s38_s13 }
  0x25   :  { %p3141_p3 = scmp.lt.u32.totalorder %s3137_s16, %s4200_s2 }
  0x27   :  { %p3143_p4 = pnand %p3141_p3, %p3138_p2 }
  0x29   :  { %3146 = shalt.err (!%p3143_p4)
}
  0x2a   :  { %s3147_s22 = scalar_lea.vmem %s39_s13, 384  ;;  %p3152_p6 = scmp.lt.s32.totalorder %s39_s13, %s39_s13 }
  0x2b   :  { %p3148_p5 = scmp.ne.s32.totalorder %s39_s13, %s3147_s22  ;;  %p3153_p7 = scmp.lt.s32.totalorder %s3147_s22, %s3147_s22 }
  0x2d   :  { %p3154_p8 = por %p3153_p7, %p3152_p6 }
  0x2f   :  { %p3155_p9 = pnand %p3154_p8, %p3148_p5 }
  0x31   :  { %3158 = shalt.err (!%p3155_p9)
}
  0x32   :  { %s3214_s0 = smov 128   ;;  %s3215_s18 = smov 8  }
  0x33   :  { %44 = dma.hbm_to_vmem [thread:$0]  %s4200_s2, 384, %s39_s13, [#allocation6], %s3214_s0, %s3214_s0, %s3215_s18  }
  0x34   :  { %s3216_s25 = smov [#allocation8]   ;;  %s3159_s29 = scalar_lea.hbm %s4201_s3, 384 }
  0x35   :  { %s50_s26 = sshll.u32 %s3216_s25, 4  ;;  %p3160_p10 = scmp.ne.s32.totalorder %s4201_s3, %s3159_s29  ;;  %s51_s26 = int_to_ptr.vmem [resolvable:$true] %s50_s26 }
  0x36   :  { %p3163_p11 = scmp.lt.u32.totalorder %s3159_s29, %s4201_s3 }
  0x38   :  { %p3165_p12 = pnand %p3163_p11, %p3160_p10 }
  0x3a   :  { %3168 = shalt.err (!%p3165_p12)
}
  0x3b   :  { %s3169_s8 = scalar_lea.vmem %s51_s26, 384  ;;  %p3174_p0 = scmp.lt.s32.totalorder %s51_s26, %s51_s26 }
  0x3c   :  { %p3170_p13 = scmp.ne.s32.totalorder %s51_s26, %s3169_s8  ;;  %p3175_p1 = scmp.lt.s32.totalorder %s3169_s8, %s3169_s8 }
  0x3e   :  { %p3176_p2 = por %p3175_p1, %p3174_p0 }
  0x40   :  { %p3177_p3 = pnand %p3176_p2, %p3170_p13 }
  0x42   :  { %3180 = shalt.err (!%p3177_p3)
}
  0x43   :  { %56 = dma.hbm_to_vmem [thread:$0]  %s4201_s3, 384, %s51_s26, [#allocation9], %s3214_s0, %s3214_s0, %s3215_s18  }
  0x44   :  { %3203 = dma.done.wait [#allocation3], 128  }
  0x45   :  { %3204 = vsyncadd [#allocation3], 4294967168 }
  0x46   :  { %3205 = dma.done.wait [#allocation6], 512  }
  0x47   :  { %3206 = vsyncadd [#allocation6], 4294966784 }
  0x48   :  { %3207 = dma.done.wait [#allocation9], 384  }
  0x49   :  { %3208 = vsyncadd [#allocation9], 4294966912  ;;  %v71_v0 = vlaneseq  ;;  %v3217_v1 = vmov 0.0|0.0   ;;  %vm4204_vm0 = vmmov 0   ;;  %v3219_v3 = vmov 0.0   ;;  %v3355_v16 = vld [vmem:[#allocation8] sm:$0xff] }
  0x4a   :  { %2914 = vmatprep.subr.bf16.mxu0 %v3217_v1  ;;  %2926 = vmatprep.subr.bf16.mxu1 %v3217_v1  ;;  %v2098_v7 = vld [vmem:[#allocation2] ss:$0 sm:$0xff]  ;;  %v2107_v8 = vld [vmem:[#allocation5] ss:$0 sm:$0xff]  ;;  %v3220_v11 = vmov 1.0|1.0  }
  0x4b   :  { %v3297_v2 = vshrl.u32 %v71_v0, 7  ;;  %2583 = vmatprep.mubr.msk.f32.mxu1 %vm4204_vm0, %v3219_v3  ;;  %2562 = vmatprep.mubr.msk.f32.mxu0 %vm4204_vm0, %v3219_v3  ;;  %v3341_v14 = vld [vmem:[#allocation2 + $0x1] ss:$0 sm:$0xff]  ;;  %v2143_v15 = vld [vmem:[#allocation5 + $0x1] ss:$0 sm:$0xff]  ;;  %v3367_v17 = vld [vmem:[#allocation7] sm:$0xff] }
  0x4c   :  { %v3378_v18 = vld [vmem:[#allocation8 + $0x8] sm:$0xff]  ;;  %v3387_v19 = vld [vmem:[#allocation7 + $0x8] sm:$0xff]  ;;  %v2170_v21 = vld [vmem:[#allocation2 + $0x2] ss:$0 sm:$0xff]  ;;  %v4225_v38 = vmov 0  ;;  %v4228_v39 = vmov 0 }
  0x4d   :  { %v3304_v4 = vadd.s32 8, %v3297_v2  ;;  %v3307_v5 = vadd.s32 16, %v3297_v2  ;;  %v3310_v6 = vadd.s32 24, %v3297_v2  ;;  %v3313_v9 = vadd.s32 32, %v3297_v2  ;;  %v225_v20 = vld [vmem:[#allocation8 + $0x10] sm:$0xf] }
  0x4e   :  { %v3316_v10 = vadd.s32 40, %v3297_v2  ;;  %vm84_vm1 = vcmp.eq.s32.totalorder %v3297_v2, %v2098_v7  ;;  %vm112_vm3 = vcmp.eq.s32.totalorder %v3297_v2, %v2107_v8  ;;  %v3333_v12 = vadd.s32 48, %v3297_v2  ;;  %v132_v22 = vld [vmem:[#allocation7 + $0x10] sm:$0xf]  ;;  %v2179_v23 = vld [vmem:[#allocation5 + $0x2] ss:$0 sm:$0xff] }
  0x4f   :  { %vm85_vm2 = vcmp.eq.s32.totalorder %v3304_v4, %v2098_v7  ;;  %vm113_vm4 = vcmp.eq.s32.totalorder %v3304_v4, %v2107_v8  ;;  %vm86_vm6 = vcmp.eq.s32.totalorder %v3307_v5, %v2098_v7  ;;  %vm87_vm7 = vcmp.eq.s32.totalorder %v3310_v6, %v2098_v7  ;;  %v3430_v24 = vld [vmem:[#allocation2 + $0x3] ss:$0 sm:$0xff]  ;;  %v3440_v26 = vld [vmem:[#allocation5 + $0x3] ss:$0 sm:$0xff]  ;;  %v3451_v28 = vld [vmem:[#allocation2 + $0x5] ss:$0 sm:$0xff] }
  0x50   :  { %vm2915_vm5 = vmpackc.low %vm85_vm2, %vm84_vm1  ;;  %vm114_vm8 = vcmp.eq.s32.totalorder %v3307_v5, %v2107_v8  ;;  %vm115_vm9 = vcmp.eq.s32.totalorder %v3310_v6, %v2107_v8  ;;  %vm88_vm13 = vcmp.eq.s32.totalorder %v3313_v9, %v2098_v7  ;;  %vm89_vm14 = vcmp.eq.s32.totalorder %v3316_v10, %v2098_v7  ;;  %v3485_v31 = vld [vmem:[#allocation5 + $0x5] ss:$0 sm:$0xff]  ;;  %v477_v33 = vld [vmem:[#allocation8 + $0x10] sm:$0xf]  ;;  %s3221_s3 = smov [#allocation10]  }
  0x51   :  { %2916 = vmatpush3.bf16.msk.msra.mxu0 %vm2915_vm5, %v3220_v11  ;;  %vm2927_vm10 = vmpackc.low %vm113_vm4, %vm112_vm3  ;;  %v3336_v13 = vadd.s32 56, %v3297_v2  ;;  %vm116_vm15 = vcmp.eq.s32.totalorder %v3313_v9, %v2107_v8  ;;  %vm117_vm1 = vcmp.eq.s32.totalorder %v3316_v10, %v2107_v8  ;;  %vm90_vm4 = vcmp.eq.s32.totalorder %v3333_v12, %v2098_v7  ;;  %v385_v35 = vld [vmem:[#allocation7 + $0x10] sm:$0xf]  ;;  %v3593_v40 = vld [vmem:[#allocation2 + $0x6] ss:$0 sm:$0xff]  ;;  %s2087_s10 = sshll.u32 %s3221_s3, 4  ;;  %s2088_s10 = int_to_ptr.vmem [resolvable:$true] %s2087_s10 }
  0x52   :  { %2928 = vmatpush3.bf16.msk.msra.mxu1 %vm2927_vm10, %v3220_v11  ;;  %2917 = vmatprep.subr.bf16.mxu0 %v3217_v1  ;;  %vm2918_vm11 = vmpackc.low %vm87_vm7, %vm86_vm6  ;;  %vm337_vm6 = vcmp.eq.s32.totalorder %v3297_v2, %v3341_v14  ;;  %vm338_vm7 = vcmp.eq.s32.totalorder %v3304_v4, %v3341_v14  ;;  %v4232_v41 = vmov 0  ;;  %v3613_v42 = vld [vmem:[#allocation5 + $0x6] ss:$0 sm:$0xff]  ;;  %v4239_v44 = vmov 0  ;;  %v3660_v46 = vld [vmem:[#allocation2 + $0x4] ss:$0 sm:$0xff]  ;;  %p3186_p5 = scmp.lt.s32.totalorder %s2088_s10, %s2088_s10 }
  0x53   :  { %2929 = vmatprep.subr.bf16.mxu1 %v3217_v1  ;;  %vm2930_vm12 = vmpackc.low %vm115_vm9, %vm114_vm8  ;;  %vm91_vm5 = vcmp.eq.s32.totalorder %v3336_v13, %v2098_v7  ;;  %vm4206_vm9 = vcmask 392192   ;;  %v4247_v47 = vmov 0  ;;  %v4251_v48 = vmov 0  ;;  %v3701_v49 = vld [vmem:[#allocation5 + $0x4] ss:$0 sm:$0xff]  ;;  %s3181_s1 = scalar_lea.vmem %s2088_s10, 128 }
  0x54   :  { %vm2921_vm2 = vmpackc.low %vm89_vm14, %vm88_vm13  ;;  %vm339_vm13 = vcmp.eq.s32.totalorder %v3307_v5, %v3341_v14  ;;  %vm340_vm14 = vcmp.eq.s32.totalorder %v3310_v6, %v3341_v14  ;;  %v4256_v50 = vmov 0  ;;  %v4264_v52 = vmov 0  ;;  %v2350_v55 = vld [vmem:[#allocation2 + $0x7] ss:$0 sm:$0xff]  ;;  %v2359_v58 = vld [vmem:[#allocation5 + $0x7] ss:$0 sm:$0xff]  ;;  %p3182_p4 = scmp.ne.s32.totalorder %s2088_s10, %s3181_s1  ;;  %p3187_p6 = scmp.lt.s32.totalorder %s3181_s1, %s3181_s1 }
  0x55   :  { %2919 = vmatpush3.bf16.msk.msra.mxu0 %vm2918_vm11, %v3220_v11  ;;  %vm2933_vm3 = vmpackc.low %vm117_vm1, %vm116_vm15  ;;  %vm365_vm11 = vcmp.eq.s32.totalorder %v3297_v2, %v2143_v15  ;;  %vm4203_vm15 = vcmask 523264   ;;  %v4272_v54 = vmov 0  ;;  %v4277_v56 = vmov 0  ;;  %v727_v63 = vld [vmem:[#allocation8 + $0x10] sm:$0xf] }
  0x56   :  { %2931 = vmatpush3.bf16.msk.msra.mxu1 %vm2930_vm12, %v3220_v11  ;;  %2920 = vmatprep.subr.bf16.mxu0 %v3217_v1  ;;  %vm2924_vm8 = vmpackc.low %vm91_vm5, %vm90_vm4  ;;  %vm366_vm12 = vcmp.eq.s32.totalorder %v3304_v4, %v2143_v15  ;;  %vm368_vm4 = vcmp.eq.s32.totalorder %v3310_v6, %v2143_v15  ;;  %vm341_vm5 = vcmp.eq.s32.totalorder %v3313_v9, %v3341_v14  ;;  %v4281_v57 = vmov 0  ;;  %v635_v7 = vld [vmem:[#allocation7 + $0x10] sm:$0xf]  ;;  %p3188_p7 = por %p3187_p6, %p3186_p5 }
  0x57   :  { %2932 = vmatprep.subr.bf16.mxu1 %v3217_v1  ;;  %vm2936_vm10 = vmpackc.low %vm338_vm7, %vm337_vm6  ;;  %vm342_vm6 = vcmp.eq.s32.totalorder %v3316_v10, %v3341_v14  ;;  %v4289_v60 = vmov 0  ;;  %v4294_v61 = vmov 0  ;;  %v4298_v62 = vmov 0 }
  0x58   :  { %vm2948_vm1 = vmpackc.low %vm366_vm12, %vm365_vm11  ;;  %vm370_vm11 = vcmp.eq.s32.totalorder %v3316_v10, %v2143_v15  ;;  %vm343_vm12 = vcmp.eq.s32.totalorder %v3333_v12, %v3341_v14  ;;  %v4303_v0 = vmov 0  ;;  %v4307_v8 = vmov 0  ;;  %p3189_p8 = pnand %p3188_p7, %p3182_p4 }
  0x59   :  { %2922 = vmatpush3.bf16.msk.msra.mxu0 %vm2921_vm2, %v3220_v11  ;;  %vm2939_vm2 = vmpackc.low %vm340_vm14, %vm339_vm13  ;;  %vm344_vm13 = vcmp.eq.s32.totalorder %v3336_v13, %v3341_v14 }
  0x5a   :  { %2934 = vmatpush3.bf16.msk.msra.mxu1 %vm2933_vm3, %v3220_v11  ;;  %2923 = vmatprep.subr.bf16.mxu0 %v3217_v1  ;;  %vm367_vm3 = vcmp.eq.s32.totalorder %v3307_v5, %v2143_v15 }
  0x5b   :  { %2935 = vmatprep.subr.bf16.mxu1 %v3217_v1  ;;  %vm2951_vm7 = vmpackc.low %vm368_vm4, %vm367_vm3  ;;  %vm588_vm3 = vcmp.eq.s32.totalorder %v3304_v4, %v2170_v21  ;;  %vm615_vm4 = vcmp.eq.s32.totalorder %v3297_v2, %v2179_v23 }
  0x5d   :  { %2925 = vmatpush3.bf16.msk.msra.mxu0 %vm2924_vm8, %v3220_v11  ;;  %2584 = vmatmul.mubr.msk.f32.vlgmr.msra.gmra.mrb[0].mxu1 %vm4206_vm9, %v3355_v16  ;;  %vm2942_vm8 = vmpackc.low %vm342_vm6, %vm341_vm5  ;;  %vm616_vm5 = vcmp.eq.s32.totalorder %v3304_v4, %v2179_v23  ;;  %vm589_vm6 = vcmp.eq.s32.totalorder %v3307_v5, %v2170_v21 }
  0x5e   :  { %2937 = vmatpush3.bf16.msk.msra.mxu1 %vm2936_vm10, %v3220_v11  ;;  %2947 = vmatprep.subr.bf16.mxu0 %v3217_v1  ;;  %vm369_vm10 = vcmp.eq.s32.totalorder %v3313_v9, %v2143_v15 }
  0x5f   :  { %2938 = vmatprep.subr.bf16.mxu1 %v3217_v1  ;;  %2586 = vmatprep.mubr.msk.f32.mxu1 %vm4204_vm0, %v3219_v3  ;;  %vm2954_vm14 = vmpackc.low %vm370_vm11, %vm369_vm10  ;;  %vm617_vm10 = vcmp.eq.s32.totalorder %v3307_v5, %v2179_v23  ;;  %vm618_vm11 = vcmp.eq.s32.totalorder %v3310_v6, %v2179_v23 }
  0x60   :  { %2563 = vmatmul.mubr.msk.f32.vlgmr.msra.gmra.mrb[0].mxu0 %vm4203_vm15, %v3367_v17 }
  0x61   :  { %2949 = vmatpush3.bf16.msk.msra.mxu0 %vm2948_vm1, %v3220_v11  ;;  %2565 = vmatprep.mubr.msk.f32.mxu0 %vm4204_vm0, %v3219_v3  ;;  %vm2945_vm1 = vmpackc.low %vm344_vm13, %vm343_vm12  ;;  %vm591_vm13 = vcmp.eq.s32.totalorder %v3313_v9, %v2170_v21 }
  0x62   :  { %2940 = vmatpush3.bf16.msk.msra.mxu1 %vm2939_vm2, %v3220_v11  ;;  %2950 = vmatprep.subr.bf16.mxu0 %v3217_v1  ;;  %vm587_vm2 = vcmp.eq.s32.totalorder %v3297_v2, %v2170_v21  ;;  %vm2969_vm12 = vmpackc.low %vm616_vm5, %vm615_vm4  ;;  %vm593_vm5 = vcmp.eq.s32.totalorder %v3333_v12, %v2170_v21 }
  0x63   :  { %2587 = vmatmul.mubr.msk.f32.gmra.mrb[2].mxu1 %vm4206_vm9, %v3378_v18  ;;  %2941 = vmatprep.subr.bf16.mxu1 %v3217_v1  ;;  %vm3445_vm4 = vmpackc.low %vm618_vm11, %vm617_vm10  ;;  %vm838_vm10 = vcmp.eq.s32.totalorder %v3304_v4, %v3430_v24 }
  0x64   :  { %2566 = vmatmul.mubr.msk.f32.gmra.mrb[2].mxu0 %vm4203_vm15, %v3387_v19  ;;  %2589 = vmatprep.mubr.msk.f32.mxu1 %vm4204_vm0, %v3219_v3 }
  0x65   :  { %2952 = vmatpush3.bf16.msk.msra.mxu0 %vm2951_vm7, %v3220_v11  ;;  %2568 = vmatprep.mubr.msk.f32.mxu0 %vm4204_vm0, %v3219_v3  ;;  %vm590_vm7 = vcmp.eq.s32.totalorder %v3310_v6, %v2170_v21 }
  0x66   :  { %2943 = vmatpush3.bf16.msk.msra.mxu1 %vm2942_vm8, %v3220_v11  ;;  %2953 = vmatprep.subr.bf16.mxu0 %v3217_v1  ;;  %vm2957_vm8 = vmpackc.low %vm588_vm3, %vm587_vm2  ;;  %vm619_vm2 = vcmp.eq.s32.totalorder %v3313_v9, %v2179_v23  ;;  %vm620_vm3 = vcmp.eq.s32.totalorder %v3316_v10, %v2179_v23  ;;  %v1635_v23 = vld [vmem:[#allocation7 + $0x10] sm:$0xf] }
  0x67   :  { %2590 = vmatmul.mubr.msk.f32.gmra.mrb[4].mxu1 %vm4206_vm9, %v225_v20  ;;  %2944 = vmatprep.subr.bf16.mxu1 %v3217_v1  ;;  %vm3475_vm11 = vmpackc.low %vm620_vm3, %vm619_vm2  ;;  %vm840_vm3 = vcmp.eq.s32.totalorder %v3310_v6, %v3430_v24 }
  0x68   :  { %2569 = vmatmul.mubr.msk.f32.gmra.mrb[4].mxu0 %vm4203_vm15, %v132_v22  ;;  %2608 = vmatprep.mubr.msk.f32.mxu1 %vm4204_vm0, %v3219_v3  ;;  %v1727_v22 = vld [vmem:[#allocation8 + $0x10] sm:$0xf] }
  0x69   :  { %2955 = vmatpush3.bf16.msk.msra.mxu0 %vm2954_vm14, %v3220_v11  ;;  %2629 = vmatprep.mubr.msk.f32.mxu0 %vm4204_vm0, %v3219_v3  ;;  %vm592_vm14 = vcmp.eq.s32.totalorder %v3316_v10, %v2170_v21 }
  0x6a   :  { %2946 = vmatpush3.bf16.msk.msra.mxu1 %vm2945_vm1, %v3220_v11  ;;  %2956 = vmatprep.subr.bf16.mxu0 %v3217_v1  ;;  %vm3434_vm1 = vmpackc.low %vm590_vm7, %vm589_vm6  ;;  %vm594_vm6 = vcmp.eq.s32.totalorder %v3336_v13, %v2170_v21 }
  0x6b   :  { %2968 = vmatprep.subr.bf16.mxu1 %v3217_v1  ;;  %vm3460_vm7 = vmpackc.low %vm592_vm14, %vm591_vm13  ;;  %vm865_vm13 = vcmp.eq.s32.totalorder %v3297_v2, %v3440_v26  ;;  %vm1338_vm14 = vcmp.eq.s32.totalorder %v3304_v4, %v3451_v28 }
  0x6c   :  { %2630 = vmatmul.mubr.msk.f32.vlgmr.msra.gmra.mrb[6].mxu0 %vm4206_vm9, %v3355_v16  ;;  %vm3494_vm2 = vmpackc.low %vm594_vm6, %vm593_vm5  ;;  %vm868_vm6 = vcmp.eq.s32.totalorder %v3310_v6, %v3440_v26 }
  0x6d   :  { %2609 = vmatmul.mubr.msk.f32.vlgmr.msra.gmra.mrb[6].mxu1 %vm4203_vm15, %v3367_v17  ;;  %2958 = vmatpush3.bf16.msk.msra.mxu0 %vm2957_vm8, %v3220_v11  ;;  %vm837_vm8 = vcmp.eq.s32.totalorder %v3297_v2, %v3430_v24 }
  0x6e   :  { %2970 = vmatpush3.bf16.msk.msra.mxu1 %vm2969_vm12, %v3220_v11  ;;  %2611 = vmatprep.mubr.msk.f32.mxu1 %vm4204_vm0, %v3219_v3  ;;  %vm1337_vm12 = vcmp.eq.s32.totalorder %v3297_v2, %v3451_v28  ;;  %vm3515_vm5 = vmpackc.low %vm838_vm10, %vm837_vm8  ;;  %vm4219_vm8 = vcmp.eq.s32.totalorder %v3304_v4, %v3440_v26 }
  0x6f   :  { %2632 = vmatprep.mubr.msk.f32.mxu0 %vm4204_vm0, %v3219_v3  ;;  %2959 = vmatprep.subr.bf16.mxu0 %v3217_v1  ;;  %vm3536_vm10 = vmpackc.low %vm4219_vm8, %vm865_vm13  ;;  %vm4222_vm13 = vcmp.eq.s32.totalorder %v3307_v5, %v3430_v24 }
  0x70   :  { %2633 = vmatmul.mubr.msk.f32.gmra.mrb[8].mxu0 %vm4206_vm9, %v3378_v18  ;;  %2971 = vmatprep.subr.bf16.mxu1 %v3217_v1  ;;  %vm3555_vm8 = vmpackc.low %vm840_vm3, %vm4222_vm13  ;;  %vm842_vm13 = vcmp.eq.s32.totalorder %v3316_v10, %v3430_v24  ;;  %vm4246_vm3 = vcmp.eq.s32.totalorder %v3310_v6, %v3485_v31 }
  0x71   :  { %2612 = vmatmul.mubr.msk.f32.gmra.mrb[8].mxu1 %vm4203_vm15, %v3387_v19  ;;  %2961 = vmatpush3.bf16.msk.msra.mxu0 %vm3434_vm1, %v3220_v11  ;;  %vm1339_vm15 = vcmp.eq.s32.totalorder %v3307_v5, %v3451_v28  ;;  %vm4230_vm1 = vcmask 523264  }
  0x72   :  { %2973 = vmatpush3.bf16.msk.msra.mxu1 %vm3445_vm4, %v3220_v11  ;;  %2614 = vmatprep.mubr.msk.f32.mxu1 %vm4204_vm0, %v3219_v3  ;;  %vm1365_vm4 = vcmp.eq.s32.totalorder %v3297_v2, %v3485_v31 }
  0x73   :  { %2635 = vmatprep.mubr.msk.f32.mxu0 %vm4204_vm0, %v3219_v3  ;;  %2962 = vmatprep.subr.bf16.mxu0 %v3217_v1  ;;  %vm3567_vm0 = vmpackc.low %vm1338_vm14, %vm1337_vm12  ;;  %vm4227_vm12 = vcmp.eq.s32.totalorder %v3310_v6, %v3451_v28 }
  0x74   :  { %v4226_v38 = vsel %vm3567_vm0, 4294967295, %v4225_v38  ;;  %2636 = vmatmul.mubr.msk.f32.gmra.mrb[10].mxu0 %vm4206_vm9, %v477_v33  ;;  %2974 = vmatprep.subr.bf16.mxu1 %v3217_v1  ;;  %vm3585_vm14 = vmpackc.low %vm4227_vm12, %vm1339_vm15  ;;  %vm4231_vm15 = vcmp.eq.s32.totalorder %v3304_v4, %v3485_v31 }
  0x75   :  { %v4229_v39 = vsel %vm3585_vm14, 4294967295, %v4228_v39  ;;  %2615 = vmatmul.mubr.msk.f32.gmra.mrb[10].mxu1 %vm4230_vm1, %v385_v35  ;;  %2964 = vmatpush3.bf16.msk.msra.mxu0 %vm3460_vm7, %v3220_v11  ;;  %vm3605_vm12 = vmpackc.low %vm4231_vm15, %vm1365_vm4  ;;  %vm4234_vm7 = vcmp.eq.s32.totalorder %v3307_v5, %v3440_v26  ;;  %vm4237_vm1 = vcmp.eq.s32.totalorder %v3313_v9, %v3451_v28  ;;  %vm4242_vm15 = vcmp.eq.s32.totalorder %v3313_v9, %v3430_v24 }
  0x76   :  { %v4233_v41 = vsel %vm3605_vm12, 4294967295, %v4232_v41  ;;  %2976 = vmatpush3.bf16.msk.msra.mxu1 %vm3475_vm11, %v3220_v11  ;;  %2965 = vmatprep.subr.bf16.mxu0 %v3217_v1  ;;  %vm3625_vm4 = vmpackc.low %vm868_vm6, %vm4234_vm7  ;;  %vm4238_vm11 = vcmp.eq.s32.totalorder %v3316_v10, %v3451_v28  ;;  %vm4241_vm7 = vmmov 0   ;;  %vm4245_vm6 = vcmp.eq.s32.totalorder %v3307_v5, %v3485_v31 }
  0x77   :  { %vm3637_vm9 = vmpackc.low %vm4238_vm11, %vm4237_vm1  ;;  %2675 = vmatprep.mubr.msk.f32.mxu1 %vm4241_vm7, %v3219_v3  ;;  %2977 = vmatprep.subr.bf16.mxu1 %v3217_v1  ;;  %vm4253_vm14 = vcmask 392192   ;;  %vm4279_vm12 = vcmp.eq.s32.totalorder %v3307_v5, %v3613_v42 }
  0x78   :  { %v4240_v44 = vsel %vm3637_vm9, 4294967295, %v4239_v44  ;;  %vm3654_vm1 = vmpackc.low %vm842_vm13, %vm4242_vm15  ;;  %2654 = vmatprep.mubr.msk.f32.mxu0 %vm4241_vm7, %v3219_v3 }
  0x79   :  { %vm3668_vm9 = vmpackc.low %vm4246_vm3, %vm4245_vm6  ;;  %vm4249_vm3 = vcmp.eq.s32.totalorder %v3333_v12, %v3451_v28  ;;  %vm4250_vm6 = vcmp.eq.s32.totalorder %v3336_v13, %v3451_v28  ;;  %2967 = vmatpush3.bf16.msk.msra.mxu0 %vm3494_vm2, %v3220_v11  ;;  %2676 = vmatmul.mubr.msk.f32.vlgmr.msra.gmra.mrb[12].mxu1 %vm4253_vm14, %v3355_v16  ;;  %vm4258_vm14 = vcmp.eq.s32.totalorder %v3313_v9, %v3440_v26 }
  0x7a   :  { %v4248_v47 = vsel %vm3668_vm9, 4294967295, %v4247_v47  ;;  %vm3688_vm9 = vmpackc.low %vm4250_vm6, %vm4249_vm3  ;;  %vm4254_vm3 = vcmp.eq.s32.totalorder %v3313_v9, %v3485_v31  ;;  %vm4255_vm6 = vcmp.eq.s32.totalorder %v3316_v10, %v3485_v31  ;;  %2979 = vmatpush3.bf16.msk.msra.mxu1 %vm3515_vm5, %v3220_v11  ;;  %2989 = vmatprep.subr.bf16.mxu0 %v3217_v1  ;;  %vm4262_vm2 = vcmp.eq.s32.totalorder %v3297_v2, %v3593_v40 }
  0x7b   :  { %v4252_v48 = vsel %vm3688_vm9, 4294967295, %v4251_v48  ;;  %vm3709_vm11 = vmpackc.low %vm4255_vm6, %vm4254_vm3  ;;  %vm4259_vm3 = vcmp.eq.s32.totalorder %v3316_v10, %v3440_v26  ;;  %vm4263_vm5 = vcmp.eq.s32.totalorder %v3304_v4, %v3593_v40  ;;  %2980 = vmatprep.subr.bf16.mxu1 %v3217_v1  ;;  %2678 = vmatprep.mubr.msk.f32.mxu1 %vm4241_vm7, %v3219_v3  ;;  %vm4271_vm9 = vcmp.eq.s32.totalorder %v3304_v4, %v3613_v42 }
  0x7c   :  { %v4257_v50 = vsel %vm3709_vm11, 4294967295, %v4256_v50  ;;  %vm3727_vm6 = vmpackc.low %vm4259_vm3, %vm4258_vm14  ;;  %vm4266_vm3 = vcmp.eq.s32.totalorder %v3333_v12, %v3430_v24  ;;  %vm4270_vm14 = vcmp.eq.s32.totalorder %v3297_v2, %v3613_v42 }
  0x7d   :  { %vm3739_vm15 = vmpackc.low %vm4263_vm5, %vm4262_vm2  ;;  %vm4267_vm2 = vcmp.eq.s32.totalorder %v3336_v13, %v3430_v24 }
  0x7e   :  { %v4265_v52 = vsel %vm3739_vm15, 4294967295, %v4264_v52  ;;  %vm3756_vm5 = vmpackc.low %vm4267_vm2, %vm4266_vm3  ;;  %vm4274_vm2 = vcmask 523264   ;;  %2982 = vmatpush3.bf16.msk.msra.mxu1 %vm3555_vm8, %v3220_v11  ;;  %vm4287_vm3 = vcmp.eq.s32.totalorder %v3313_v9, %v3593_v40  ;;  %vm1866_vm8 = vcmp.eq.s32.totalorder %v3304_v4, %v2359_v58 }
  0x7f   :  { %vm3768_vm15 = vmpackc.low %vm4271_vm9, %vm4270_vm14  ;;  %2655 = vmatmul.mubr.msk.f32.vlgmr.msra.gmra.mrb[12].mxu0 %vm4274_vm2, %v3367_v17  ;;  %vm4275_vm9 = vcmp.eq.s32.totalorder %v3307_v5, %v3593_v40  ;;  %vm4276_vm14 = vcmp.eq.s32.totalorder %v3310_v6, %v3593_v40  ;;  %vm4288_vm2 = vcmp.eq.s32.totalorder %v3316_v10, %v3593_v40  ;;  %2983 = vmatprep.subr.bf16.mxu1 %v3217_v1 }
  0x80   :  { %v4273_v54 = vsel %vm3768_vm15, 4294967295, %v4272_v54  ;;  %vm3788_vm11 = vmpackc.low %vm4276_vm14, %vm4275_vm9  ;;  %2991 = vmatpush3.bf16.msk.msra.mxu0 %vm3536_vm10, %v3220_v11  ;;  %2657 = vmatprep.mubr.msk.f32.mxu0 %vm4241_vm7, %v3219_v3  ;;  %vm4280_vm9 = vcmp.eq.s32.totalorder %v3310_v6, %v3613_v42  ;;  %vm4283_vm10 = vcmp.eq.s32.totalorder %v3297_v2, %v3660_v46 }
  0x81   :  { %v4278_v56 = vsel %vm3788_vm11, 4294967295, %v4277_v56  ;;  %vm3807_vm14 = vmpackc.low %vm4280_vm9, %vm4279_vm12  ;;  %2992 = vmatprep.subr.bf16.mxu0 %v3217_v1  ;;  %vm4284_vm12 = vcmp.eq.s32.totalorder %v3304_v4, %v3660_v46  ;;  %vm4291_vm11 = vcmask 392192  }
  0x82   :  { %v4282_v57 = vsel %vm3807_vm14, 4294967295, %v4281_v57  ;;  %vm3825_vm9 = vmpackc.low %vm4284_vm12, %vm4283_vm10  ;;  %2679 = vmatmul.mubr.msk.f32.gmra.mrb[14].mxu1 %vm4291_vm11, %v3378_v18  ;;  %vm4292_vm10 = vcmp.eq.s32.totalorder %v3297_v2, %v3701_v49  ;;  %vm4293_vm12 = vcmp.eq.s32.totalorder %v3304_v4, %v3701_v49  ;;  %vm4306_vm11 = vcmp.eq.s32.totalorder %v3304_v4, %v2350_v55 }
  0x83   :  { %vm3835_vm13 = vmpackc.low %vm4288_vm2, %vm4287_vm3  ;;  %vm4296_vm3 = vcmp.eq.s32.totalorder %v3313_v9, %v3613_v42  ;;  %vm4297_vm2 = vcmp.eq.s32.totalorder %v3316_v10, %v3613_v42  ;;  %2681 = vmatprep.mubr.msk.f32.mxu1 %vm4241_vm7, %v3219_v3  ;;  %2985 = vmatpush3.bf16.msk.msra.mxu1 %vm3654_vm1, %v3220_v11  ;;  %v4311_v4 = vmov 0  ;;  %vm4314_vm1 = vcmp.eq.s32.totalorder %v3297_v2, %v2359_v58 }
  0x84   :  { %v4290_v60 = vsel %vm3835_vm13, 4294967295, %v4289_v60  ;;  %vm3850_vm15 = vmpackc.low %vm4293_vm12, %vm4292_vm10  ;;  %vm4300_vm13 = vcmask 523264   ;;  %vm4301_vm10 = vcmp.eq.s32.totalorder %v3333_v12, %v3593_v40  ;;  %vm4302_vm12 = vcmp.eq.s32.totalorder %v3336_v13, %v3593_v40  ;;  %2994 = vmatpush3.bf16.msk.msra.mxu0 %vm3625_vm4, %v3220_v11  ;;  %2986 = vmatprep.subr.bf16.mxu1 %v3217_v1 }
  0x85   :  { %v4295_v61 = vsel %vm3850_vm15, 4294967295, %v4294_v61  ;;  %vm3860_vm14 = vmpackc.low %vm4297_vm2, %vm4296_vm3  ;;  %2658 = vmatmul.mubr.msk.f32.gmra.mrb[14].mxu0 %vm4300_vm13, %v3387_v19  ;;  %vm4305_vm13 = vcmp.eq.s32.totalorder %v3297_v2, %v2350_v55  ;;  %vm1842_vm2 = vcmp.eq.s32.totalorder %v3316_v10, %v2350_v55  ;;  %2995 = vmatprep.subr.bf16.mxu0 %v3217_v1  ;;  %vm4309_vm4 = vcmp.eq.s32.totalorder %v3307_v5, %v2350_v55 }
  0x86   :  { %v4299_v62 = vsel %vm3860_vm14, 4294967295, %v4298_v62  ;;  %vm3876_vm3 = vmpackc.low %vm4302_vm12, %vm4301_vm10  ;;  %2660 = vmatprep.mubr.msk.f32.mxu0 %vm4241_vm7, %v3219_v3  ;;  %vm1841_vm12 = vcmp.eq.s32.totalorder %v3313_v9, %v2350_v55  ;;  %vm1843_vm15 = vcmp.eq.s32.totalorder %v3333_v12, %v2350_v55 }
  0x87   :  { %v4304_v0 = vsel %vm3876_vm3, 4294967295, %v4303_v0  ;;  %vm3891_vm10 = vmpackc.low %vm4306_vm11, %vm4305_vm13  ;;  %vm4310_vm3 = vcmp.eq.s32.totalorder %v3310_v6, %v2350_v55  ;;  %vm1867_vm11 = vcmp.eq.s32.totalorder %v3307_v5, %v2359_v58  ;;  %vm1868_vm13 = vcmp.eq.s32.totalorder %v3310_v6, %v2359_v58  ;;  %2988 = vmatpush3.bf16.msk.msra.mxu1 %vm3756_vm5, %v3220_v11 }
  0x88   :  { %v4308_v8 = vsel %vm3891_vm10, 4294967295, %v4307_v8  ;;  %vm3905_vm14 = vmpackc.low %vm4310_vm3, %vm4309_vm4  ;;  %vm4313_vm10 = vcmask 392192   ;;  %vm1844_vm3 = vcmp.eq.s32.totalorder %v3336_v13, %v2350_v55  ;;  %vm4317_vm4 = vcmask 523264   ;;  %2997 = vmatpush3.bf16.msk.msra.mxu0 %vm3727_vm6, %v3220_v11  ;;  %3010 = vmatprep.subr.bf16.mxu1 %v3217_v1 }
  0x89   :  { %v4312_v4 = vsel %vm3905_vm14, 4294967295, %v4311_v4  ;;  %2682 = vmatmul.mubr.msk.f32.gmra.mrb[16].mxu1 %vm4313_vm10, %v727_v63  ;;  %vm3915_vm0 = vmpackc.low %vm1866_vm8, %vm4314_vm1  ;;  %2661 = vmatmul.mubr.msk.f32.gmra.mrb[16].mxu0 %vm4317_vm4, %v635_v7  ;;  %vm1869_vm10 = vcmp.eq.s32.totalorder %v3313_v9, %v2359_v58  ;;  %vm1870_vm8 = vcmp.eq.s32.totalorder %v3316_v10, %v2359_v58  ;;  %vm1089_vm6 = vcmp.eq.s32.totalorder %v3307_v5, %v3660_v46 }
  0x8a   :  { %2700 = vmatprep.mubr.msk.f32.mxu1 %vm4241_vm7, %v3219_v3  ;;  %vm3924_vm14 = vmpackc.low %vm1842_vm2, %vm1841_vm12  ;;  %2721 = vmatprep.mubr.msk.f32.mxu0 %vm4241_vm7, %v3219_v3  ;;  %vm1090_vm12 = vcmp.eq.s32.totalorder %v3310_v6, %v3660_v46  ;;  %vm4326_vm5 = vcmask 392192  }
  0x8b   :  { %vm3935_vm1 = vmpackc.low %vm1868_vm13, %vm1867_vm11  ;;  %2998 = vmatprep.subr.bf16.mxu0 %v3217_v1  ;;  %vm1118_vm13 = vcmp.eq.s32.totalorder %v3310_v6, %v3701_v49  ;;  %v885_v6 = vld [vmem:[#allocation7 + $0x10] sm:$0xf] }
  0x8c   :  { %vm3943_vm2 = vmpackc.low %vm1844_vm3, %vm1843_vm15  ;;  %vm1117_vm15 = vcmp.eq.s32.totalorder %v3307_v5, %v3701_v49  ;;  %v977_v5 = vld [vmem:[#allocation8 + $0x10] sm:$0xf] }
  0x8d   :  { %vm3952_vm11 = vmpackc.low %vm1870_vm8, %vm1869_vm10  ;;  %2722 = vmatmul.mubr.msk.f32.vlgmr.msra.gmra.mrb[18].mxu0 %vm4326_vm5, %v3355_v16  ;;  %vm1091_vm5 = vcmp.eq.s32.totalorder %v3313_v9, %v3660_v46 }
  0x8e   :  { %vm4327_vm3 = vmmov %vm4317_vm4  ;;  %3000 = vmatpush3.bf16.msk.msra.mxu0 %vm3825_vm9, %v3220_v11  ;;  %vm4328_vm4 = vnez %v4295_v61  ;;  %2724 = vmatprep.mubr.msk.f32.mxu0 %vm4241_vm7, %v3219_v3  ;;  %vm1092_vm9 = vcmp.eq.s32.totalorder %v3316_v10, %v3660_v46 }
  0x8f   :  { %2701 = vmatmul.mubr.msk.f32.vlgmr.msra.gmra.mrb[18].mxu1 %vm4327_vm3, %v3367_v17  ;;  %vm3002_vm10 = vmpackc.low %vm1090_vm12, %vm1089_vm6  ;;  %3001 = vmatprep.subr.bf16.mxu0 %v3217_v1  ;;  %vm4329_vm3 = vcmask 392192   ;;  %vm1119_vm6 = vcmp.eq.s32.totalorder %v3313_v9, %v3701_v49  ;;  %vm1120_vm12 = vcmp.eq.s32.totalorder %v3316_v10, %v3701_v49  ;;  %v1227_v9 = vld [vmem:[#allocation8 + $0x10] sm:$0xf]  ;;  %v1135_v10 = vld [vmem:[#allocation7 + $0x10] sm:$0xf] }
  0x90   :  { %3012 = vmatpush3.bf16.msk.msra.mxu1 %vm4328_vm4, %v3220_v11  ;;  %2703 = vmatprep.mubr.msk.f32.mxu1 %vm4241_vm7, %v3219_v3  ;;  %vm3014_vm8 = vmpackc.low %vm1118_vm13, %vm1117_vm15  ;;  %vm4330_vm4 = vcmask 523264  }
  0x91   :  { %2725 = vmatmul.mubr.msk.f32.gmra.mrb[20].mxu0 %vm4329_vm3, %v3378_v18  ;;  %3013 = vmatprep.subr.bf16.mxu1 %v3217_v1  ;;  %vm3005_vm15 = vmpackc.low %vm1092_vm9, %vm1091_vm5  ;;  %vm1093_vm3 = vcmp.eq.s32.totalorder %v3333_v12, %v3660_v46  ;;  %v1477_v12 = vld [vmem:[#allocation8 + $0x10] sm:$0xf] }
  0x92   :  { %3003 = vmatpush3.bf16.msk.msra.mxu0 %vm3002_vm10, %v3220_v11  ;;  %2727 = vmatprep.mubr.msk.f32.mxu0 %vm4241_vm7, %v3219_v3  ;;  %vm3017_vm13 = vmpackc.low %vm1120_vm12, %vm1119_vm6  ;;  %vm1094_vm10 = vcmp.eq.s32.totalorder %v3336_v13, %v3660_v46  ;;  %vm4334_vm6 = vnez %v4226_v38  ;;  %v1385_v13 = vld [vmem:[#allocation7 + $0x10] sm:$0xf] }
  0x93   :  { %2704 = vmatmul.mubr.msk.f32.gmra.mrb[20].mxu1 %vm4330_vm4, %v3387_v19  ;;  %3004 = vmatprep.subr.bf16.mxu0 %v3217_v1  ;;  %vm4331_vm4 = vcmask 392192   ;;  %vm3008_vm5 = vmpackc.low %vm1094_vm10, %vm1093_vm3 }
  0x94   :  { %3015 = vmatpush3.bf16.msk.msra.mxu1 %vm3014_vm8, %v3220_v11  ;;  %2706 = vmatprep.mubr.msk.f32.mxu1 %vm4241_vm7, %v3219_v3  ;;  %vm4332_vm8 = vcmask 523264   ;;  %vm4333_vm9 = vmmov %vm4331_vm4 }
  0x95   :  { %2728 = vmatmul.mubr.msk.f32.gmra.mrb[22].mxu0 %vm4331_vm4, %v977_v5  ;;  %3016 = vmatprep.subr.bf16.mxu1 %v3217_v1  ;;  %vm4335_vm12 = vmmov %vm4332_vm8 }
  0x96   :  { %3006 = vmatpush3.bf16.msk.msra.mxu0 %vm3005_vm15, %v3220_v11  ;;  %2746 = vmatprep.mubr.msk.f32.mxu0 %vm4241_vm7, %v3219_v3  ;;  %vm4336_vm15 = vnez %v4233_v41  ;;  %vm4338_vm3 = vmmov %vm4331_vm4  ;;  %vm4340_vm4 = vnez %v4248_v47 }
  0x97   :  { %2707 = vmatmul.mubr.msk.f32.gmra.mrb[22].mxu1 %vm4332_vm8, %v885_v6  ;;  %3007 = vmatprep.subr.bf16.mxu0 %v3217_v1  ;;  %vm4339_vm10 = vmmov %vm4332_vm8  ;;  %vm4341_vm8 = vnez %v4240_v44 }
  0x98   :  { %3018 = vmatpush3.bf16.msk.msra.mxu1 %vm3017_vm13, %v3220_v11  ;;  %2767 = vmatprep.mubr.msk.f32.mxu1 %vm4241_vm7, %v3219_v3  ;;  %vm4337_vm13 = vnez %v4229_v39 }
  0x99   :  { %3019 = vmatprep.subr.bf16.mxu1 %v3217_v1 }
  0x9a   :  { %3009 = vmatpush3.bf16.msk.msra.mxu0 %vm3008_vm5, %v3220_v11  ;;  %vm4342_vm5 = vmmov %vm4338_vm3 }
  0x9b   :  { %2768 = vmatmul.mubr.msk.f32.vlgmr.msra.gmra.mrb[24].mxu1 %vm4333_vm9, %v3355_v16  ;;  %3031 = vmatprep.subr.bf16.mxu0 %v3217_v1  ;;  %vm4343_vm9 = vmmov %vm4339_vm10 }
  0x9c   :  { %3021 = vmatpush3.bf16.msk.msra.mxu1 %vm4334_vm6, %v3220_v11  ;;  %2770 = vmatprep.mubr.msk.f32.mxu1 %vm4241_vm7, %v3219_v3  ;;  %vm4344_vm6 = vnez %v4257_v50 }
  0x9d   :  { %3022 = vmatprep.subr.bf16.mxu1 %v3217_v1  ;;  %2747 = vmatmul.mubr.msk.f32.vlgmr.msra.gmra.mrb[24].mxu0 %vm4335_vm12, %v3367_v17  ;;  %vm4345_vm12 = vnez %v4252_v48 }
  0x9e   :  { %3033 = vmatpush3.bf16.msk.msra.mxu0 %vm4336_vm15, %v3220_v11  ;;  %2749 = vmatprep.mubr.msk.f32.mxu0 %vm4241_vm7, %v3219_v3  ;;  %vm4346_vm15 = vmmov %vm4338_vm3 }
  0x9f   :  { %3034 = vmatprep.subr.bf16.mxu0 %v3217_v1  ;;  %2771 = vmatmul.mubr.msk.f32.gmra.mrb[26].mxu1 %vm4338_vm3, %v3378_v18  ;;  %vm4348_vm3 = vnez %v4265_v52 }
  0xa0   :  { %3024 = vmatpush3.bf16.msk.msra.mxu1 %vm4337_vm13, %v3220_v11  ;;  %2773 = vmatprep.mubr.msk.f32.mxu1 %vm4241_vm7, %v3219_v3  ;;  %vm4347_vm13 = vmmov %vm4343_vm9 }
  0xa1   :  { %3025 = vmatprep.subr.bf16.mxu1 %v3217_v1  ;;  %2750 = vmatmul.mubr.msk.f32.gmra.mrb[26].mxu0 %vm4339_vm10, %v3387_v19  ;;  %vm4349_vm10 = vnez %v4273_v54 }
  0xa2   :  { %3036 = vmatpush3.bf16.msk.msra.mxu0 %vm4340_vm4, %v3220_v11  ;;  %2752 = vmatprep.mubr.msk.f32.mxu0 %vm4241_vm7, %v3219_v3  ;;  %vm4350_vm4 = vmmov %vm4342_vm5 }
  0xa3   :  { %3037 = vmatprep.subr.bf16.mxu0 %v3217_v1  ;;  %2774 = vmatmul.mubr.msk.f32.gmra.mrb[28].mxu1 %vm4342_vm5, %v1227_v9  ;;  %vm4352_vm5 = vnez %v4278_v56 }
  0xa4   :  { %3027 = vmatpush3.bf16.msk.msra.mxu1 %vm4341_vm8, %v3220_v11  ;;  %2792 = vmatprep.mubr.msk.f32.mxu1 %vm4241_vm7, %v3219_v3  ;;  %vm4351_vm8 = vmmov %vm4343_vm9 }
  0xa5   :  { %3028 = vmatprep.subr.bf16.mxu1 %v3217_v1  ;;  %2753 = vmatmul.mubr.msk.f32.gmra.mrb[28].mxu0 %vm4343_vm9, %v1135_v10  ;;  %vm4353_vm9 = vnez %v4282_v57 }
  0xa6   :  { %3039 = vmatpush3.bf16.msk.msra.mxu0 %vm4344_vm6, %v3220_v11  ;;  %2813 = vmatprep.mubr.msk.f32.mxu0 %vm4241_vm7, %v3219_v3  ;;  %vm4354_vm6 = vmmov %vm4350_vm4 }
  0xa7   :  { %3040 = vmatprep.subr.bf16.mxu0 %v3217_v1 }
  0xa8   :  { %3030 = vmatpush3.bf16.msk.msra.mxu1 %vm4345_vm12, %v3220_v11  ;;  %vm4355_vm12 = vmmov %vm4351_vm8 }
  0xa9   :  { %3052 = vmatprep.subr.bf16.mxu1 %v3217_v1  ;;  %2814 = vmatmul.mubr.msk.f32.vlgmr.msra.gmra.mrb[30].mxu0 %vm4346_vm15, %v3355_v16  ;;  %vm4356_vm15 = vnez %v4290_v60 }
  0xaa   :  { %3042 = vmatpush3.bf16.msk.msra.mxu0 %vm4348_vm3, %v3220_v11  ;;  %2816 = vmatprep.mubr.msk.f32.mxu0 %vm4241_vm7, %v3219_v3  ;;  %vm4358_vm3 = vnez %v4304_v0 }
  0xab   :  { %2793 = vmatmul.mubr.msk.f32.vlgmr.msra.gmra.mrb[30].mxu1 %vm4347_vm13, %v3367_v17  ;;  %3043 = vmatprep.subr.bf16.mxu0 %v3217_v1  ;;  %vm4357_vm13 = vnez %v4299_v62 }
  0xac   :  { %3054 = vmatpush3.bf16.msk.msra.mxu1 %vm4349_vm10, %v3220_v11  ;;  %2795 = vmatprep.mubr.msk.f32.mxu1 %vm4241_vm7, %v3219_v3  ;;  %vm4359_vm10 = vmmov %vm4350_vm4 }
  0xad   :  { %2817 = vmatmul.mubr.msk.f32.gmra.mrb[32].mxu0 %vm4350_vm4, %v3378_v18  ;;  %3055 = vmatprep.subr.bf16.mxu1 %v3217_v1  ;;  %vm4360_vm4 = vnez %v4308_v8 }
  0xae   :  { %3045 = vmatpush3.bf16.msk.msra.mxu0 %vm4352_vm5, %v3220_v11  ;;  %2819 = vmatprep.mubr.msk.f32.mxu0 %vm4241_vm7, %v3219_v3  ;;  %vm4361_vm5 = vnez %v4312_v4 }
  0xaf   :  { %2796 = vmatmul.mubr.msk.f32.gmra.mrb[32].mxu1 %vm4351_vm8, %v3387_v19  ;;  %3046 = vmatprep.subr.bf16.mxu0 %v3217_v1 }
  0xb0   :  { %3057 = vmatpush3.bf16.msk.msra.mxu1 %vm4353_vm9, %v3220_v11  ;;  %2798 = vmatprep.mubr.msk.f32.mxu1 %vm4241_vm7, %v3219_v3  ;;  %vm4362_vm9 = vmmov %vm4354_vm6 }
  0xb1   :  { %2820 = vmatmul.mubr.msk.f32.gmra.mrb[34].mxu0 %vm4354_vm6, %v1477_v12  ;;  %3058 = vmatprep.subr.bf16.mxu1 %v3217_v1  ;;  %vm4363_vm6 = vmmov %vm4351_vm8 }
  0xb2   :  { %3048 = vmatpush3.bf16.msk.msra.mxu0 %vm4356_vm15, %v3220_v11  ;;  %2838 = vmatprep.mubr.msk.f32.mxu0 %vm4241_vm7, %v3219_v3 }
  0xb3   :  { %2799 = vmatmul.mubr.msk.f32.gmra.mrb[34].mxu1 %vm4355_vm12, %v1385_v13  ;;  %3049 = vmatprep.subr.bf16.mxu0 %v3217_v1  ;;  %vm4365_vm12 = vmmov %vm4363_vm6 }
  0xb4   :  { %3060 = vmatpush3.bf16.msk.msra.mxu1 %vm4357_vm13, %v3220_v11  ;;  %2859 = vmatprep.mubr.msk.f32.mxu1 %vm4241_vm7, %v3219_v3 }
  0xb5   :  { %3061 = vmatprep.subr.bf16.mxu1 %v3217_v1 }
  0xb6   :  { %3051 = vmatpush3.bf16.msk.msra.mxu0 %vm4358_vm3, %v3220_v11  ;;  %vm320_vm3 = vcmask 1043456  }
  0xb7   :  { %2860 = vmatmul.mubr.msk.f32.vlgmr.msra.gmra.mrb[36].mxu1 %vm4359_vm10, %v3355_v16  ;;  %3073 = vmatprep.subr.bf16.mxu0 %v3217_v1 }
  0xb8   :  { %3063 = vmatpush3.bf16.msk.msra.mxu1 %vm4360_vm4, %v3220_v11  ;;  %2862 = vmatprep.mubr.msk.f32.mxu1 %vm4241_vm7, %v3219_v3 }
  0xb9   :  { %3064 = vmatprep.subr.bf16.mxu1 %v3217_v1  ;;  %2839 = vmatmul.mubr.msk.f32.vlgmr.msra.gmra.mrb[36].mxu0 %vm4351_vm8, %v3367_v17 }
  0xba   :  { %3075 = vmatpush3.bf16.msk.msra.mxu0 %vm3915_vm0, %v3220_v11  ;;  %2841 = vmatprep.mubr.msk.f32.mxu0 %vm4241_vm7, %v3219_v3  ;;  %vm4364_vm0 = vmmov %vm4362_vm9 }
  0xbb   :  { %3076 = vmatprep.subr.bf16.mxu0 %v3217_v1  ;;  %2863 = vmatmul.mubr.msk.f32.gmra.mrb[38].mxu1 %vm4362_vm9, %v3378_v18 }
  0xbc   :  { %3066 = vmatpush3.bf16.msk.msra.mxu1 %vm4361_vm5, %v3220_v11  ;;  %2865 = vmatprep.mubr.msk.f32.mxu1 %vm4241_vm7, %v3219_v3 }
  0xbd   :  { %3067 = vmatprep.subr.bf16.mxu1 %v3217_v1  ;;  %2842 = vmatmul.mubr.msk.f32.gmra.mrb[38].mxu0 %vm4363_vm6, %v3387_v19 }
  0xbe   :  { %3078 = vmatpush3.bf16.msk.msra.mxu0 %vm3935_vm1, %v3220_v11  ;;  %2844 = vmatprep.mubr.msk.f32.mxu0 %vm4241_vm7, %v3219_v3  ;;  %vm4367_vm1 = vmmov %vm4363_vm6 }
  0xbf   :  { %3079 = vmatprep.subr.bf16.mxu0 %v3217_v1  ;;  %2866 = vmatmul.mubr.msk.f32.gmra.mrb[40].mxu1 %vm4364_vm0, %v1727_v22  ;;  %vm4369_vm15 = vmmov %vm4367_vm1 }
  0xc0   :  { %3069 = vmatpush3.bf16.msk.msra.mxu1 %vm3924_vm14, %v3220_v11  ;;  %2884 = vmatprep.mubr.msk.f32.mxu1 %vm4241_vm7, %v3219_v3  ;;  %vm4366_vm14 = vmmov %vm4364_vm0 }
  0xc1   :  { %3070 = vmatprep.subr.bf16.mxu1 %v3217_v1  ;;  %2845 = vmatmul.mubr.msk.f32.gmra.mrb[40].mxu0 %vm4365_vm12, %v1635_v23  ;;  %v1977_v1 = vld [vmem:[#allocation8 + $0x10] sm:$0xf]  ;;  %vm4371_vm13 = vmmov %vm4367_vm1 }
  0xc2   :  { %3081 = vmatpush3.bf16.msk.msra.mxu0 %vm3952_vm11, %v3220_v11  ;;  %2905 = vmatprep.mubr.msk.f32.mxu0 %vm4241_vm7, %v3219_v3  ;;  %vm4368_vm11 = vmmov %vm4364_vm0 }
  0xc4   :  { %3072 = vmatpush3.bf16.msk.msra.mxu1 %vm3943_vm2, %v3220_v11  ;;  %v1885_v11 = vld [vmem:[#allocation7 + $0x10] sm:$0xf]  ;;  %vm4370_vm2 = vmmov %vm4364_vm0 }
  0xc5   :  { %2906 = vmatmul.mubr.msk.f32.vlgmr.msra.gmra.mrb[42].mxu0 %vm4366_vm14, %v3355_v16 }
  0xc6   :  { %2908 = vmatprep.mubr.msk.f32.mxu0 %vm4241_vm7, %v3219_v3 }
  0xc7   :  { %2885 = vmatmul.mubr.msk.f32.vlgmr.msra.gmra.mrb[42].mxu1 %vm4367_vm1, %v3367_v17 }
  0xc8   :  { %2887 = vmatprep.mubr.msk.f32.mxu1 %vm4241_vm7, %v3219_v3 }
  0xc9   :  { %2909 = vmatmul.mubr.msk.f32.gmra.mrb[44].mxu0 %vm4368_vm11, %v3378_v18 }
  0xca   :  { %2911 = vmatprep.mubr.msk.f32.mxu0 %vm4241_vm7, %v3219_v3 }
  0xcb   :  { %2888 = vmatmul.mubr.msk.f32.gmra.mrb[44].mxu1 %vm4369_vm15, %v3387_v19 }
  0xcc   :  { %2890 = vmatprep.mubr.msk.f32.mxu1 %vm4241_vm7, %v3219_v3 }
  0xcd   :  { %2912 = vmatmul.mubr.msk.f32.gmra.mrb[46].mxu0 %vm4370_vm2, %v1977_v1 }
  0xcf   :  { %2891 = vmatmul.mubr.msk.f32.gmra.mrb[46].mxu1 %vm4371_vm13, %v1885_v11 }
 0x130   :  { %v302_v16 = vpop.f32.mrb[0].mxu1 }
 0x131   :  { %v2585_v17 = vpop.f32.mrb[1].mxu1 }
 0x133   :  { %v209_v24 = vpop.f32.mrb[0].mxu0 }
 0x134   :  { %v316_v25 = vmul.f32 %v302_v16, %v209_v24  ;;  %v2564_v18 = vpop.f32.mrb[1].mxu0 }
 0x136   :  { %v307_v26 = vpop.f32.mrb[2].mxu1 }
 0x137   :  { %v214_v27 = vpop.f32.mrb[2].mxu0  ;;  %v2588_v19 = vpop.f32.mrb[3].mxu1 }
 0x138   :  { %v317_v28 = vmul.f32 %v307_v26, %v214_v27  ;;  %v2567_v29 = vpop.f32.mrb[3].mxu0 }
 0x13a   :  { %v319_v30 = vadd.f32 %v317_v28, %v316_v25  ;;  %v312_v31 = vpop.f32.mrb[4].mxu1 }
 0x13b   :  { %v219_v32 = vpop.f32.mrb[4].mxu0  ;;  %v2591_v3 = vpop.f32.mrb[5].mxu1 }
 0x13c   :  { %v318_v33 = vmul.f32 %v312_v31, %v219_v32  ;;  %v2570_v34 = vpop.f32.mrb[5].mxu0 }
 0x13e   :  { %v321_v35 = vsel %vm320_vm3, %v318_v33, 0.0 }
 0x13f   :  { %v322_v36 = vadd.f32 %v321_v35, %v319_v30  ;;  %v553_v37 = vpop.f32.mrb[6].mxu0 }
 0x140   :  { %v461_v38 = vpop.f32.mrb[6].mxu1  ;;  %v2631_v39 = vpop.f32.mrb[7].mxu0 }
 0x141   :  { %v323_v40 = vrot.slane %v322_v36, 4  ;;  %v567_v41 = vmul.f32 %v553_v37, %v461_v38  ;;  %v2610_v42 = vpop.f32.mrb[7].mxu1 }
 0x143   :  { %v324_v43 = vadd.f32 %v323_v40, %v322_v36  ;;  %v558_v44 = vpop.f32.mrb[8].mxu0 }
 0x144   :  { %v466_v45 = vpop.f32.mrb[8].mxu1  ;;  %v2634_v46 = vpop.f32.mrb[9].mxu0 }
 0x145   :  { %v325_v47 = vrot.slane %v324_v43, 2  ;;  %v568_v48 = vmul.f32 %v558_v44, %v466_v45  ;;  %v2613_v49 = vpop.f32.mrb[9].mxu1 }
 0x147   :  { %v326_v50 = vadd.f32 %v325_v47, %v324_v43  ;;  %v570_v51 = vadd.f32 %v568_v48, %v567_v41  ;;  %v563_v52 = vpop.f32.mrb[10].mxu0 }
 0x148   :  { %v471_v53 = vpop.f32.mrb[10].mxu1  ;;  %v2637_v54 = vpop.f32.mrb[11].mxu0 }
 0x149   :  { %v327_v55 = vrot.slane %v326_v50, 1  ;;  %v569_v56 = vmul.f32 %v563_v52, %v471_v53  ;;  %v2616_v57 = vpop.f32.mrb[11].mxu1 }
 0x14b   :  { %v328_v58 = vadd.f32 %v327_v55, %v326_v50  ;;  %v571_v59 = vsel %vm320_vm3, %v569_v56, 0.0 }
 0x14c   :  { %v572_v60 = vadd.f32 %v571_v59, %v570_v51  ;;  %v803_v61 = vpop.f32.mrb[12].mxu1 }
 0x14d   :  { %v329_v62 = vmul.f32 5.0, %v328_v58  ;;  %v2677_v63 = vpop.f32.mrb[13].mxu1 }
 0x14e   :  { %v573_v0 = vrot.slane %v572_v60, 4 }
 0x14f   :  { %330 = vst [vmem:[#allocation10] sm:$0x1] %v329_v62 }
 0x150   :  { %v574_v8 = vadd.f32 %v573_v0, %v572_v60 }
 0x152   :  { %v711_v7 = vpop.f32.mrb[12].mxu0  ;;  %v575_v15 = vrot.slane %v574_v8, 2 }
 0x153   :  { %v817_v4 = vmul.f32 %v803_v61, %v711_v7  ;;  %v2656_v14 = vpop.f32.mrb[13].mxu0 }
 0x154   :  { %v576_v5 = vadd.f32 %v575_v15, %v574_v8 }
 0x155   :  { %v808_v2 = vpop.f32.mrb[14].mxu1 }
 0x156   :  { %v2680_v21 = vpop.f32.mrb[15].mxu1  ;;  %v577_v10 = vrot.slane %v576_v5, 1 }
 0x158   :  { %v716_v20 = vpop.f32.mrb[14].mxu0  ;;  %v578_v1 = vadd.f32 %v577_v10, %v576_v5 }
 0x159   :  { %v818_v6 = vmul.f32 %v808_v2, %v716_v20  ;;  %v2659_v9 = vpop.f32.mrb[15].mxu0 }
 0x15a   :  { %v579_v17 = vmul.f32 5.0, %v578_v1 }
 0x15b   :  { %v820_v12 = vadd.f32 %v818_v6, %v817_v4 }
 0x15c   :  { %v813_v13 = vpop.f32.mrb[16].mxu1  ;;  %v721_v22 = vpop.f32.mrb[16].mxu0  ;;  %580 = vst [vmem:[#allocation10 + $0x1] sm:$0x1] %v579_v17 }
 0x15d   :  { %v2683_v23 = vpop.f32.mrb[17].mxu1  ;;  %v819_v11 = vmul.f32 %v813_v13, %v721_v22  ;;  %v2662_v16 = vpop.f32.mrb[17].mxu0 }
 0x15f   :  { %v821_v24 = vsel %vm320_vm3, %v819_v11, 0.0 }
 0x160   :  { %v822_v25 = vadd.f32 %v821_v24, %v820_v12  ;;  %v1053_v18 = vpop.f32.mrb[18].mxu0 }
 0x161   :  { %v2723_v27 = vpop.f32.mrb[19].mxu0 }
 0x162   :  { %v961_v26 = vpop.f32.mrb[18].mxu1  ;;  %v823_v19 = vrot.slane %v822_v25, 4 }
 0x163   :  { %v1067_v28 = vmul.f32 %v1053_v18, %v961_v26  ;;  %v2702_v29 = vpop.f32.mrb[19].mxu1 }
 0x164   :  { %v824_v30 = vadd.f32 %v823_v19, %v822_v25  ;;  %v1058_v31 = vpop.f32.mrb[20].mxu0 }
 0x165   :  { %v2726_v3 = vpop.f32.mrb[21].mxu0 }
 0x166   :  { %v966_v32 = vpop.f32.mrb[20].mxu1  ;;  %v825_v33 = vrot.slane %v824_v30, 2 }
 0x167   :  { %v1068_v34 = vmul.f32 %v1058_v31, %v966_v32  ;;  %v2705_v35 = vpop.f32.mrb[21].mxu1 }
 0x168   :  { %v826_v36 = vadd.f32 %v825_v33, %v824_v30  ;;  %v1063_v38 = vpop.f32.mrb[22].mxu0 }
 0x169   :  { %v1070_v37 = vadd.f32 %v1068_v34, %v1067_v28  ;;  %v2729_v40 = vpop.f32.mrb[23].mxu0 }
 0x16a   :  { %v971_v39 = vpop.f32.mrb[22].mxu1  ;;  %v827_v41 = vrot.slane %v826_v36, 1 }
 0x16b   :  { %v1069_v42 = vmul.f32 %v1063_v38, %v971_v39  ;;  %v2708_v43 = vpop.f32.mrb[23].mxu1 }
 0x16c   :  { %v828_v44 = vadd.f32 %v827_v41, %v826_v36 }
 0x16d   :  { %v1071_v45 = vsel %vm320_vm3, %v1069_v42, 0.0 }
 0x16e   :  { %v1072_v46 = vadd.f32 %v1071_v45, %v1070_v37  ;;  %v1303_v47 = vpop.f32.mrb[24].mxu1  ;;  %v829_v48 = vmul.f32 5.0, %v828_v44 }
 0x16f   :  { %v2769_v49 = vpop.f32.mrb[25].mxu1 }
 0x170   :  { %v1073_v50 = vrot.slane %v1072_v46, 4  ;;  %830 = vst [vmem:[#allocation10 + $0x2] sm:$0x1] %v829_v48  ;;  %v1211_v51 = vpop.f32.mrb[24].mxu0 }
 0x171   :  { %v1317_v53 = vmul.f32 %v1303_v47, %v1211_v51  ;;  %v2748_v54 = vpop.f32.mrb[25].mxu0 }
 0x172   :  { %v1074_v52 = vadd.f32 %v1073_v50, %v1072_v46  ;;  %v1308_v56 = vpop.f32.mrb[26].mxu1 }
 0x173   :  { %v2772_v58 = vpop.f32.mrb[27].mxu1 }
 0x174   :  { %v1075_v55 = vrot.slane %v1074_v52, 2  ;;  %v1216_v57 = vpop.f32.mrb[26].mxu0 }
 0x175   :  { %v1318_v60 = vmul.f32 %v1308_v56, %v1216_v57  ;;  %v2751_v61 = vpop.f32.mrb[27].mxu0 }
 0x176   :  { %v1076_v59 = vadd.f32 %v1075_v55, %v1074_v52  ;;  %v1313_v0 = vpop.f32.mrb[28].mxu1 }
 0x177   :  { %v1320_v63 = vadd.f32 %v1318_v60, %v1317_v53  ;;  %v2775_v8 = vpop.f32.mrb[29].mxu1 }
 0x178   :  { %v1077_v62 = vrot.slane %v1076_v59, 1  ;;  %v1221_v7 = vpop.f32.mrb[28].mxu0 }
 0x179   :  { %v1319_v14 = vmul.f32 %v1313_v0, %v1221_v7  ;;  %v2754_v15 = vpop.f32.mrb[29].mxu0 }
 0x17a   :  { %v1078_v4 = vadd.f32 %v1077_v62, %v1076_v59 }
 0x17b   :  { %v1321_v20 = vsel %vm320_vm3, %v1319_v14, 0.0 }
 0x17c   :  { %v1079_v2 = vmul.f32 5.0, %v1078_v4  ;;  %v1322_v21 = vadd.f32 %v1321_v20, %v1320_v63  ;;  %v1553_v5 = vpop.f32.mrb[30].mxu0 }
 0x17d   :  { %v2815_v9 = vpop.f32.mrb[31].mxu0 }
 0x17e   :  { %1080 = vst [vmem:[#allocation10 + $0x3] sm:$0x1] %v1079_v2  ;;  %v1461_v6 = vpop.f32.mrb[30].mxu1  ;;  %v1323_v10 = vrot.slane %v1322_v21, 4 }
 0x17f   :  { %v1567_v12 = vmul.f32 %v1553_v5, %v1461_v6  ;;  %v2794_v13 = vpop.f32.mrb[31].mxu1 }
 0x180   :  { %v1324_v22 = vadd.f32 %v1323_v10, %v1322_v21  ;;  %v1558_v23 = vpop.f32.mrb[32].mxu0 }
 0x181   :  { %v2818_v11 = vpop.f32.mrb[33].mxu0 }
 0x182   :  { %v1466_v1 = vpop.f32.mrb[32].mxu1  ;;  %v1325_v16 = vrot.slane %v1324_v22, 2 }
 0x183   :  { %v1568_v17 = vmul.f32 %v1558_v23, %v1466_v1  ;;  %v2797_v24 = vpop.f32.mrb[33].mxu1 }
 0x184   :  { %v1326_v25 = vadd.f32 %v1325_v16, %v1324_v22  ;;  %v1563_v26 = vpop.f32.mrb[34].mxu0 }
 0x185   :  { %v1570_v18 = vadd.f32 %v1568_v17, %v1567_v12  ;;  %v2821_v19 = vpop.f32.mrb[35].mxu0 }
 0x186   :  { %v1471_v27 = vpop.f32.mrb[34].mxu1  ;;  %v1327_v28 = vrot.slane %v1326_v25, 1 }
 0x187   :  { %v1569_v29 = vmul.f32 %v1563_v26, %v1471_v27  ;;  %v2800_v30 = vpop.f32.mrb[35].mxu1 }
 0x188   :  { %v1328_v31 = vadd.f32 %v1327_v28, %v1326_v25 }
 0x189   :  { %v1571_v32 = vsel %vm320_vm3, %v1569_v29, 0.0 }
 0x18a   :  { %v1572_v3 = vadd.f32 %v1571_v32, %v1570_v18  ;;  %v1803_v33 = vpop.f32.mrb[36].mxu1  ;;  %v1329_v34 = vmul.f32 5.0, %v1328_v31 }
 0x18b   :  { %v2861_v35 = vpop.f32.mrb[37].mxu1 }
 0x18c   :  { %v1573_v36 = vrot.slane %v1572_v3, 4  ;;  %1330 = vst [vmem:[#allocation10 + $0x4] sm:$0x1] %v1329_v34  ;;  %v1711_v37 = vpop.f32.mrb[36].mxu0 }
 0x18d   :  { %v1817_v39 = vmul.f32 %v1803_v33, %v1711_v37  ;;  %v2840_v40 = vpop.f32.mrb[37].mxu0 }
 0x18e   :  { %v1574_v38 = vadd.f32 %v1573_v36, %v1572_v3  ;;  %v1808_v42 = vpop.f32.mrb[38].mxu1 }
 0x18f   :  { %v2864_v44 = vpop.f32.mrb[39].mxu1 }
 0x190   :  { %v1575_v41 = vrot.slane %v1574_v38, 2  ;;  %v1716_v43 = vpop.f32.mrb[38].mxu0 }
 0x191   :  { %v1818_v46 = vmul.f32 %v1808_v42, %v1716_v43  ;;  %v2843_v47 = vpop.f32.mrb[39].mxu0 }
 0x192   :  { %v1576_v45 = vadd.f32 %v1575_v41, %v1574_v38  ;;  %v1813_v50 = vpop.f32.mrb[40].mxu1 }
 0x193   :  { %v1820_v49 = vadd.f32 %v1818_v46, %v1817_v39  ;;  %v2867_v52 = vpop.f32.mrb[41].mxu1 }
 0x194   :  { %v1577_v48 = vrot.slane %v1576_v45, 1  ;;  %v1721_v51 = vpop.f32.mrb[40].mxu0 }
 0x195   :  { %v1819_v54 = vmul.f32 %v1813_v50, %v1721_v51  ;;  %v2846_v55 = vpop.f32.mrb[41].mxu0 }
 0x196   :  { %v1578_v53 = vadd.f32 %v1577_v48, %v1576_v45 }
 0x197   :  { %v1821_v57 = vsel %vm320_vm3, %v1819_v54, 0.0 }
 0x198   :  { %v1579_v56 = vmul.f32 5.0, %v1578_v53  ;;  %v1822_v58 = vadd.f32 %v1821_v57, %v1820_v49  ;;  %v2053_v59 = vpop.f32.mrb[42].mxu0 }
 0x199   :  { %v2907_v61 = vpop.f32.mrb[43].mxu0 }
 0x19a   :  { %1580 = vst [vmem:[#allocation10 + $0x5] sm:$0x1] %v1579_v56  ;;  %v1961_v60 = vpop.f32.mrb[42].mxu1  ;;  %v1823_v62 = vrot.slane %v1822_v58, 4 }
 0x19b   :  { %v2067_v63 = vmul.f32 %v2053_v59, %v1961_v60  ;;  %v2886_v0 = vpop.f32.mrb[43].mxu1 }
 0x19c   :  { %v1824_v7 = vadd.f32 %v1823_v62, %v1822_v58  ;;  %v2058_v8 = vpop.f32.mrb[44].mxu0 }
 0x19d   :  { %v2910_v14 = vpop.f32.mrb[45].mxu0 }
 0x19e   :  { %v1966_v4 = vpop.f32.mrb[44].mxu1  ;;  %v1825_v15 = vrot.slane %v1824_v7, 2 }
 0x19f   :  { %v2068_v2 = vmul.f32 %v2058_v8, %v1966_v4  ;;  %v2889_v20 = vpop.f32.mrb[45].mxu1 }
 0x1a0   :  { %v1826_v21 = vadd.f32 %v1825_v15, %v1824_v7  ;;  %v2063_v6 = vpop.f32.mrb[46].mxu0 }
 0x1a1   :  { %v2070_v5 = vadd.f32 %v2068_v2, %v2067_v63  ;;  %v2913_v10 = vpop.f32.mrb[47].mxu0 }
 0x1a2   :  { %v1971_v9 = vpop.f32.mrb[46].mxu1  ;;  %v1827_v12 = vrot.slane %v1826_v21, 1 }
 0x1a3   :  { %v2069_v13 = vmul.f32 %v2063_v6, %v1971_v9  ;;  %v2892_v22 = vpop.f32.mrb[47].mxu1 }
 0x1a4   :  { %v1828_v23 = vadd.f32 %v1827_v12, %v1826_v21 }
 0x1a5   :  { %v2071_v1 = vsel %vm320_vm3, %v2069_v13, 0.0 }
 0x1a6   :  { %v2072_v11 = vadd.f32 %v2071_v1, %v2070_v5  ;;  %v1829_v16 = vmul.f32 5.0, %v1828_v23 }
 0x1a8   :  { %v2073_v17 = vrot.slane %v2072_v11, 4  ;;  %1830 = vst [vmem:[#allocation10 + $0x6] sm:$0x1] %v1829_v16 }
 0x1aa   :  { %v2074_v24 = vadd.f32 %v2073_v17, %v2072_v11 }
 0x1ac   :  { %v2075_v25 = vrot.slane %v2074_v24, 2 }
 0x1ae   :  { %v2076_v18 = vadd.f32 %v2075_v25, %v2074_v24 }
 0x1b0   :  { %v2077_v26 = vrot.slane %v2076_v18, 1 }
 0x1b2   :  { %v2078_v27 = vadd.f32 %v2077_v26, %v2076_v18 }
 0x1b4   :  { %v2079_v19 = vmul.f32 5.0, %v2078_v27 }
 0x1b6   :  { %2080 = vst [vmem:[#allocation10 + $0x7] sm:$0x1] %v2079_v19 }
 0x1b7   :  { %3192 = shalt.err (!%p3189_p8)
}
 0x1b8   :  { %s3193_s13 = scalar_lea.hbm %s4202_s4, 128 }
 0x1b9   :  { %p3194_p9 = scmp.ne.s32.totalorder %s4202_s4, %s3193_s13  ;;  %p3197_p10 = scmp.lt.u32.totalorder %s3193_s13, %s4202_s4 }
 0x1bb   :  { %p3199_p11 = pnand %p3197_p10, %p3194_p9 }
 0x1bd   :  { %3202 = shalt.err (!%p3199_p11)
}
 0x1be   :  { %2090 = dma.vmem_to_hbm [thread:$0]  %s2088_s10, 128, %s4202_s4, [#allocation4]  }
 0x1bf   :  { %3209 = dma.done.wait [#allocation4], 128  }
 0x1c0   :  { %3210 = vsyncadd [#allocation4], 4294967168 }
 0x1c1   :  { %2094 = vsyncpa [#allocation3], 1 }
 0x1c2   :  { %2095 = vsyncpa [#allocation6], 1 }
 0x1c3   :  { %2096 = vsyncpa [#allocation9], 1 }
 0x1c4   :  { %2097 = vsyncpa [#allocation4], 1 }

</bundles_post_ra>
